<compile_context>
chip_gen: v7x
topology: tpu7x:2x2x1
jax: 0.10.0
libtpu: 0.0.40
codegen_flags: <defaults>
</compile_context>

<pallas_src>
import functools

import jax
import jax.numpy as jnp
from jax.experimental import pallas as pl
from jax.experimental.pallas import tpu as pltpu


PAD_ID = 0


# ----------------------------- in-kernel helpers -----------------------------

def _layernorm(x, g, b, eps=1e-12):
    mu = jnp.mean(x, axis=-1, keepdims=True)
    var = jnp.mean((x - mu) ** 2, axis=-1, keepdims=True)
    return (x - mu) * jax.lax.rsqrt(var + eps) * g + b


# ----------------------------- Pallas kernel ---------------------------------

def albert_encoder_kernel(txt_ref, emb_ref, eg_ref, eb_ref,
                          wq_ref, bq_ref, wk_ref, bk_ref, wv_ref, bv_ref,
                          wo_ref, bo_ref, l1g_ref, l1b_ref,
                          w1_ref, b1_ref, w2_ref, b2_ref, l2g_ref, l2b_ref,
                          out_ref, *, n_head, n_enc_layer):
    # One grid step == one batch element.
    # txt block: [1, 1, S] int32 ; emb block: [1, S, D] bf16 ; weights replicated.
    S, D = emb_ref.shape[1], emb_ref.shape[2]
    dh = D // n_head
    scale = 1.0 / (dh ** 0.5)

    # Additive key mask built in-kernel from raw tokens -> [1, 1, S] f32.
    mask = jnp.where(txt_ref[0] == PAD_ID, -1e9, 0.0).astype(jnp.float32)[None]

    # Embedding LayerNorm (f32 math).
    x0 = _layernorm(emb_ref[0].astype(jnp.float32), eg_ref[...], eb_ref[...])  # [S, D]

    def layer(_, x):
        xb = x.astype(jnp.bfloat16)

        # --- Multi-head self attention (bf16 operands, f32 accumulation) ---
        q = jnp.dot(xb, wq_ref[...], preferred_element_type=jnp.float32) + bq_ref[...]
        k = jnp.dot(xb, wk_ref[...], preferred_element_type=jnp.float32) + bk_ref[...]
        v = jnp.dot(xb, wv_ref[...], preferred_element_type=jnp.float32) + bv_ref[...]

        # Batched heads: [S, D] -> [H, S, dh]   (no per-head lane slicing / concat)
        qh = jnp.transpose(q.astype(jnp.bfloat16).reshape(S, n_head, dh), (1, 0, 2))
        kh = jnp.transpose(k.astype(jnp.bfloat16).reshape(S, n_head, dh), (1, 0, 2))
        vh = jnp.transpose(v.astype(jnp.bfloat16).reshape(S, n_head, dh), (1, 0, 2))

        s = jnp.einsum('hqd,hkd->hqk', qh, kh,
                       preferred_element_type=jnp.float32) * scale + mask   # [H,S,S]

        # Softmax: f32 max-subtract, reciprocal on the EUP slot.
        s_max = jnp.max(s, axis=-1, keepdims=True)
        e = jnp.exp(s - s_max)
        p = e * pl.reciprocal(jnp.sum(e, axis=-1, keepdims=True), approx=True)

        ctx = jnp.einsum('hqk,hkd->hqd', p.astype(jnp.bfloat16), vh,
                         preferred_element_type=jnp.float32)                # [H,S,dh]
        ctx = jnp.transpose(ctx, (1, 0, 2)).reshape(S, D)

        attn = jnp.dot(ctx.astype(jnp.bfloat16), wo_ref[...],
                       preferred_element_type=jnp.float32) + bo_ref[...]
        h1 = _layernorm(x + attn, l1g_ref[...], l1b_ref[...])

        # --- Feed-forward network ---
        f = jnp.dot(h1.astype(jnp.bfloat16), w1_ref[...],
                    preferred_element_type=jnp.float32) + b1_ref[...]
        f = jax.nn.gelu(f)  # tanh-approx GELU (see TODO above)
        f = jnp.dot(f.astype(jnp.bfloat16), w2_ref[...],
                    preferred_element_type=jnp.float32) + b2_ref[...]
        return _layernorm(h1 + f, l2g_ref[...], l2b_ref[...])

    # ALBERT weight sharing: same weights applied n_enc_layer times, activation
    # stays resident in VMEM across the whole stack.
    x_final = jax.lax.fori_loop(0, n_enc_layer, layer, x0)
    out_ref[0] = x_final.astype(out_ref.dtype)


# ----------------------------- Pallas wrapper ---------------------------------

def _vmem_budget_bytes(S, D, F, n_head):
    bf16, f32 = 2, 4
    weights = (4 * D * D + 2 * D * F) * bf16          # shared encoder matmul weights
    vectors = (12 * D + F) * f32                      # biases + LN params
    blocks = 2 * (2 * S * D * bf16 + 4 * S)           # emb/out/txt blocks, double-buffered
    work = (8 * S * D + 2 * S * F + 4 * n_head * S * S) * f32
    total = 2 * weights + vectors + blocks + work + (8 << 20)
    return int(min(max(total, 32 << 20), 64 << 20))   # valid on v5e/v6e/v7x


def albert_pallas(txt3, emb, params, *, n_head, n_enc_layer):
    B, S, D = emb.shape
    F = params["w1"].shape[1]

    def rep(shape):
        nd = len(shape)
        return pl.BlockSpec(shape, lambda b, nd=nd: (0,) * nd)

    kernel = functools.partial(albert_encoder_kernel, n_head=n_head,
                               n_enc_layer=n_enc_layer)
    return pl.pallas_call(
        kernel,
        out_shape=jax.ShapeDtypeStruct((B, S, D), jnp.bfloat16),
        grid=(B,),
        in_specs=[
            pl.BlockSpec((1, 1, S), lambda b: (b, 0, 0)),   # txt -> in-kernel mask
            pl.BlockSpec((1, S, D), lambda b: (b, 0, 0)),   # summed embeddings (bf16)
            rep((1, D)), rep((1, D)),                       # emb LN gamma, beta
            rep((D, D)), rep((1, D)),                       # wq, bq
            rep((D, D)), rep((1, D)),                       # wk, bk
            rep((D, D)), rep((1, D)),                       # wv, bv
            rep((D, D)), rep((1, D)),                       # wo, bo
            rep((1, D)), rep((1, D)),                       # ln1 gamma, beta
            rep((D, F)), rep((1, F)),                       # w1, b1
            rep((F, D)), rep((1, D)),                       # w2, b2
            rep((1, D)), rep((1, D)),                       # ln2 gamma, beta
        ],
        out_specs=pl.BlockSpec((1, S, D), lambda b: (b, 0, 0)),
        compiler_params=pltpu.CompilerParams(
            dimension_semantics=("parallel",),
            vmem_limit_bytes=_vmem_budget_bytes(S, D, F, n_head)),
    )(txt3, emb,
      params["emb_ln_g"], params["emb_ln_b"],
      params["wq"], params["bq"], params["wk"], params["bk"],
      params["wv"], params["bv"], params["wo"], params["bo"],
      params["ln1_g"], params["ln1_b"],
      params["w1"], params["b1"], params["w2"], params["b2"],
      params["ln2_g"], params["ln2_b"])


# ----------------------------- ALBERT forward ---------------------------------

def init_params(key, vocab_size, seq_length, d_model, d_ff):
    ks = jax.random.split(key, 9)
    nf32 = lambda k, shape: (0.02 * jax.random.normal(k, shape)).astype(jnp.float32)
    nbf16 = lambda k, shape: (0.02 * jax.random.normal(k, shape)).astype(jnp.bfloat16)
    ones = lambda shape: jnp.ones(shape, jnp.float32)
    zeros = lambda shape: jnp.zeros(shape, jnp.float32)
    return {
        # input embedding tables (gather stays in XLA)
        "tok_emb": nf32(ks[0], (vocab_size, d_model)),
        "pos_emb": nf32(ks[1], (seq_length, d_model)),
        "seg_emb": nf32(ks[2], (2, d_model)),
        "emb_ln_g": ones((1, d_model)), "emb_ln_b": zeros((1, d_model)),
        # shared encoder layer (ALBERT weight sharing); matmul weights in bf16
        "wq": nbf16(ks[3], (d_model, d_model)), "bq": zeros((1, d_model)),
        "wk": nbf16(ks[4], (d_model, d_model)), "bk": zeros((1, d_model)),
        "wv": nbf16(ks[5], (d_model, d_model)), "bv": zeros((1, d_model)),
        "wo": nbf16(ks[6], (d_model, d_model)), "bo": zeros((1, d_model)),
        "ln1_g": ones((1, d_model)), "ln1_b": zeros((1, d_model)),
        "w1": nbf16(ks[7], (d_model, d_ff)), "b1": zeros((1, d_ff)),
        "w2": nbf16(ks[8], (d_ff, d_model)), "b2": zeros((1, d_model)),
        "ln2_g": ones((1, d_model)), "ln2_b": zeros((1, d_model)),
    }


def albert_forward(txt, seg, params, *, n_head, n_enc_layer):
    B, S = txt.shape
    # Embedding gathers are glue in XLA; the sum is written once as bf16 and
    # consumed directly by the fused Pallas kernel (LN + mask + encoder stack).
    emb = (params["tok_emb"][txt]
           + params["pos_emb"][None, :S, :]
           + params["seg_emb"][seg]).astype(jnp.bfloat16)
    txt3 = txt.reshape(B, 1, S).astype(jnp.int32)
    return albert_pallas(txt3, emb, params, n_head=n_head, n_enc_layer=n_enc_layer)


# ----------------------------- main --------------------------------------------

if __name__ == "__main__":
    vocab_size, seq_length, d_model, d_ff = 100, 8, 32, 64
    n_head, dropout_p, n_enc_layer = 4, 0.1, 2
    batch = 2

    key = jax.random.PRNGKey(0)
    k_param, k_txt = jax.random.split(key)

    params = init_params(k_param, vocab_size, seq_length, d_model, d_ff)

    txt = jax.random.randint(k_txt, (batch, seq_length), 1, vocab_size, dtype=jnp.int32)
    txt = txt.at[1, 6:].set(PAD_ID)  # some padding in batch element 1
    seg = jnp.array([[0, 0, 0, 0, 1, 1, 1, 1]] * batch, dtype=jnp.int32)

    fwd = jax.jit(functools.partial(albert_forward, n_head=n_head,
                                    n_enc_layer=n_enc_layer))
    out = jax.block_until_ready(fwd(txt, seg, params))

    assert out.shape == (batch, seq_length, d_model)
    assert bool(jnp.all(jnp.isfinite(out.astype(jnp.float32))))
    print("KERNEL_OK")
</pallas_src>

<mosaic_0001>
module attributes {stable_mosaic.version = 11 : i64} {
  func.func @albert_encoder_kernel(%arg0: i32, %arg1: memref<1x1x8xi32, #tpu.memory_space<vmem>>, %arg2: memref<1x8x32xbf16, #tpu.memory_space<vmem>>, %arg3: memref<1x32xf32, #tpu.memory_space<vmem>>, %arg4: memref<1x32xf32, #tpu.memory_space<vmem>>, %arg5: memref<32x32xbf16, #tpu.memory_space<vmem>>, %arg6: memref<1x32xf32, #tpu.memory_space<vmem>>, %arg7: memref<32x32xbf16, #tpu.memory_space<vmem>>, %arg8: memref<1x32xf32, #tpu.memory_space<vmem>>, %arg9: memref<32x32xbf16, #tpu.memory_space<vmem>>, %arg10: memref<1x32xf32, #tpu.memory_space<vmem>>, %arg11: memref<32x32xbf16, #tpu.memory_space<vmem>>, %arg12: memref<1x32xf32, #tpu.memory_space<vmem>>, %arg13: memref<1x32xf32, #tpu.memory_space<vmem>>, %arg14: memref<1x32xf32, #tpu.memory_space<vmem>>, %arg15: memref<32x64xbf16, #tpu.memory_space<vmem>>, %arg16: memref<1x64xf32, #tpu.memory_space<vmem>>, %arg17: memref<64x32xbf16, #tpu.memory_space<vmem>>, %arg18: memref<1x32xf32, #tpu.memory_space<vmem>>, %arg19: memref<1x32xf32, #tpu.memory_space<vmem>>, %arg20: memref<1x32xf32, #tpu.memory_space<vmem>>, %arg21: memref<1x8x32xbf16, #tpu.memory_space<vmem>>) attributes {dimension_semantics = [#tpu.dimension_semantics<parallel>], iteration_bounds = array<i64: 2>, scalar_prefetch = 0 : i64, scratch_operands = 0 : i64, tpu.core_type = #tpu.core_type<tc>, window_params = [{transform_indices = @transform_0, window_bounds = array<i64: 1, 1, 8>}, {transform_indices = @transform_1, window_bounds = array<i64: 1, 8, 32>}, {pipeline_mode = #tpu.pipeline_mode<synchronous>, transform_indices = @transform_2, window_bounds = array<i64: 1, 32>}, {pipeline_mode = #tpu.pipeline_mode<synchronous>, transform_indices = @transform_3, window_bounds = array<i64: 1, 32>}, {pipeline_mode = #tpu.pipeline_mode<synchronous>, transform_indices = @transform_4, window_bounds = array<i64: 32, 32>}, {pipeline_mode = #tpu.pipeline_mode<synchronous>, transform_indices = @transform_5, window_bounds = array<i64: 1, 32>}, {pipeline_mode = #tpu.pipeline_mode<synchronous>, transform_indices = @transform_6, window_bounds = array<i64: 32, 32>}, {pipeline_mode = #tpu.pipeline_mode<synchronous>, transform_indices = @transform_7, window_bounds = array<i64: 1, 32>}, {pipeline_mode = #tpu.pipeline_mode<synchronous>, transform_indices = @transform_8, window_bounds = array<i64: 32, 32>}, {pipeline_mode = #tpu.pipeline_mode<synchronous>, transform_indices = @transform_9, window_bounds = array<i64: 1, 32>}, {pipeline_mode = #tpu.pipeline_mode<synchronous>, transform_indices = @transform_10, window_bounds = array<i64: 32, 32>}, {pipeline_mode = #tpu.pipeline_mode<synchronous>, transform_indices = @transform_11, window_bounds = array<i64: 1, 32>}, {pipeline_mode = #tpu.pipeline_mode<synchronous>, transform_indices = @transform_12, window_bounds = array<i64: 1, 32>}, {pipeline_mode = #tpu.pipeline_mode<synchronous>, transform_indices = @transform_13, window_bounds = array<i64: 1, 32>}, {pipeline_mode = #tpu.pipeline_mode<synchronous>, transform_indices = @transform_14, window_bounds = array<i64: 32, 64>}, {pipeline_mode = #tpu.pipeline_mode<synchronous>, transform_indices = @transform_15, window_bounds = array<i64: 1, 64>}, {pipeline_mode = #tpu.pipeline_mode<synchronous>, transform_indices = @transform_16, window_bounds = array<i64: 64, 32>}, {pipeline_mode = #tpu.pipeline_mode<synchronous>, transform_indices = @transform_17, window_bounds = array<i64: 1, 32>}, {pipeline_mode = #tpu.pipeline_mode<synchronous>, transform_indices = @transform_18, window_bounds = array<i64: 1, 32>}, {pipeline_mode = #tpu.pipeline_mode<synchronous>, transform_indices = @transform_19, window_bounds = array<i64: 1, 32>}, {transform_indices = @transform_20, window_bounds = array<i64: 1, 8, 32>}]} {
    %c0 = arith.constant 0 : index
    %c0_0 = arith.constant 0 : index
    %c0_1 = arith.constant 0 : index
    %0 = vector.load %arg1[%c0, %c0_0, %c0_1] : memref<1x1x8xi32, #tpu.memory_space<vmem>>, vector<1x1x8xi32>
    %1 = vector.shape_cast %0 : vector<1x1x8xi32> to vector<1x8xi32>
    %c0_i32 = arith.constant 0 : i32
    %2 = vector.broadcast %c0_i32 : i32 to vector<1x8xi32>
    %3 = arith.cmpi eq, %1, %2 : vector<1x8xi32>
    %cst = arith.constant -1.000000e+09 : f32
    %cst_2 = arith.constant 0.000000e+00 : f32
    %4 = vector.broadcast %cst : f32 to vector<1x8xf32>
    %5 = vector.broadcast %cst_2 : f32 to vector<1x8xf32>
    %6 = arith.select %3, %4, %5 : vector<1x8xi1>, vector<1x8xf32>
    %7 = vector.shape_cast %6 : vector<1x8xf32> to vector<1x1x8xf32>
    %c0_3 = arith.constant 0 : index
    %c0_4 = arith.constant 0 : index
    %c0_5 = arith.constant 0 : index
    %8 = vector.load %arg2[%c0_3, %c0_4, %c0_5] : memref<1x8x32xbf16, #tpu.memory_space<vmem>>, vector<1x8x32xbf16>
    %9 = vector.shape_cast %8 : vector<1x8x32xbf16> to vector<8x32xbf16>
    %10 = arith.extf %9 : vector<8x32xbf16> to vector<8x32xf32>
    %c0_6 = arith.constant 0 : index
    %c0_7 = arith.constant 0 : index
    %11 = vector.load %arg3[%c0_6, %c0_7] : memref<1x32xf32, #tpu.memory_space<vmem>>, vector<1x32xf32>
    %c0_8 = arith.constant 0 : index
    %c0_9 = arith.constant 0 : index
    %12 = vector.load %arg4[%c0_8, %c0_9] : memref<1x32xf32, #tpu.memory_space<vmem>>, vector<1x32xf32>
    %cst_10 = arith.constant dense<0.000000e+00> : vector<8xf32>
    %13 = vector.multi_reduction <add>, %10, %cst_10 [1] : vector<8x32xf32> to vector<8xf32>
    %14 = vector.shape_cast %13 : vector<8xf32> to vector<8x1xf32>
    %cst_11 = arith.constant 3.200000e+01 : f32
    %15 = vector.broadcast %cst_11 : f32 to vector<8x1xf32>
    %16 = arith.divf %14, %15 : vector<8x1xf32>
    %17 = vector.broadcast %16 : vector<8x1xf32> to vector<8x32xf32>
    %18 = arith.subf %10, %17 : vector<8x32xf32>
    %19 = arith.mulf %18, %18 : vector<8x32xf32>
    %cst_12 = arith.constant dense<0.000000e+00> : vector<8xf32>
    %20 = vector.multi_reduction <add>, %19, %cst_12 [1] : vector<8x32xf32> to vector<8xf32>
    %21 = vector.shape_cast %20 : vector<8xf32> to vector<8x1xf32>
    %cst_13 = arith.constant 3.200000e+01 : f32
    %22 = vector.broadcast %cst_13 : f32 to vector<8x1xf32>
    %23 = arith.divf %21, %22 : vector<8x1xf32>
    %24 = vector.broadcast %16 : vector<8x1xf32> to vector<8x32xf32>
    %25 = arith.subf %10, %24 : vector<8x32xf32>
    %cst_14 = arith.constant 9.99999996E-13 : f32
    %26 = vector.broadcast %cst_14 : f32 to vector<8x1xf32>
    %27 = arith.addf %23, %26 : vector<8x1xf32>
    %28 = math.rsqrt %27 : vector<8x1xf32>
    %29 = vector.broadcast %28 : vector<8x1xf32> to vector<8x32xf32>
    %30 = arith.mulf %25, %29 : vector<8x32xf32>
    %31 = vector.broadcast %11 : vector<1x32xf32> to vector<8x32xf32>
    %32 = arith.mulf %30, %31 : vector<8x32xf32>
    %33 = vector.broadcast %12 : vector<1x32xf32> to vector<8x32xf32>
    %34 = arith.addf %32, %33 : vector<8x32xf32>
    %c0_i32_15 = arith.constant 0 : i32
    %c2_i32 = arith.constant 2 : i32
    %35 = arith.addi %c0_i32_15, %c2_i32 : i32
    %c1_i32 = arith.constant 1 : i32
    %36 = scf.for %arg22 = %c0_i32_15 to %35 step %c1_i32 iter_args(%arg23 = %34) -> (vector<8x32xf32>)  : i32 {
      %41 = arith.truncf %arg23 : vector<8x32xf32> to vector<8x32xbf16>
      %c0_19 = arith.constant 0 : index
      %c0_20 = arith.constant 0 : index
      %42 = vector.load %arg5[%c0_19, %c0_20] : memref<32x32xbf16, #tpu.memory_space<vmem>>, vector<32x32xbf16>
      %cst_21 = arith.constant dense<0.000000e+00> : vector<8x32xf32>
      %43 = tpu.matmul %41, %42, %cst_21 {dimension_numbers = #tpu.dot_dimension_numbers<[1], [0], [0], [1], [0, 0, 1, 1], [], []>} : vector<8x32xbf16>, vector<32x32xbf16>, vector<8x32xf32> -> vector<8x32xf32>
      %c0_22 = arith.constant 0 : index
      %c0_23 = arith.constant 0 : index
      %44 = vector.load %arg6[%c0_22, %c0_23] : memref<1x32xf32, #tpu.memory_space<vmem>>, vector<1x32xf32>
      %45 = vector.broadcast %44 : vector<1x32xf32> to vector<8x32xf32>
      %46 = arith.addf %43, %45 : vector<8x32xf32>
      %c0_24 = arith.constant 0 : index
      %c0_25 = arith.constant 0 : index
      %47 = vector.load %arg7[%c0_24, %c0_25] : memref<32x32xbf16, #tpu.memory_space<vmem>>, vector<32x32xbf16>
      %cst_26 = arith.constant dense<0.000000e+00> : vector<8x32xf32>
      %48 = tpu.matmul %41, %47, %cst_26 {dimension_numbers = #tpu.dot_dimension_numbers<[1], [0], [0], [1], [0, 0, 1, 1], [], []>} : vector<8x32xbf16>, vector<32x32xbf16>, vector<8x32xf32> -> vector<8x32xf32>
      %c0_27 = arith.constant 0 : index
      %c0_28 = arith.constant 0 : index
      %49 = vector.load %arg8[%c0_27, %c0_28] : memref<1x32xf32, #tpu.memory_space<vmem>>, vector<1x32xf32>
      %50 = vector.broadcast %49 : vector<1x32xf32> to vector<8x32xf32>
      %51 = arith.addf %48, %50 : vector<8x32xf32>
      %c0_29 = arith.constant 0 : index
      %c0_30 = arith.constant 0 : index
      %52 = vector.load %arg9[%c0_29, %c0_30] : memref<32x32xbf16, #tpu.memory_space<vmem>>, vector<32x32xbf16>
      %cst_31 = arith.constant dense<0.000000e+00> : vector<8x32xf32>
      %53 = tpu.matmul %41, %52, %cst_31 {dimension_numbers = #tpu.dot_dimension_numbers<[1], [0], [0], [1], [0, 0, 1, 1], [], []>} : vector<8x32xbf16>, vector<32x32xbf16>, vector<8x32xf32> -> vector<8x32xf32>
      %c0_32 = arith.constant 0 : index
      %c0_33 = arith.constant 0 : index
      %54 = vector.load %arg10[%c0_32, %c0_33] : memref<1x32xf32, #tpu.memory_space<vmem>>, vector<1x32xf32>
      %55 = vector.broadcast %54 : vector<1x32xf32> to vector<8x32xf32>
      %56 = arith.addf %53, %55 : vector<8x32xf32>
      %57 = arith.truncf %46 : vector<8x32xf32> to vector<8x32xbf16>
      %58 = vector.shape_cast %57 : vector<8x32xbf16> to vector<8x4x8xbf16>
      %59 = tpu.transpose %58, [1, 0, 2] : vector<8x4x8xbf16> -> vector<4x8x8xbf16>
      %60 = arith.truncf %51 : vector<8x32xf32> to vector<8x32xbf16>
      %61 = vector.shape_cast %60 : vector<8x32xbf16> to vector<8x4x8xbf16>
      %62 = tpu.transpose %61, [1, 0, 2] : vector<8x4x8xbf16> -> vector<4x8x8xbf16>
      %63 = arith.truncf %56 : vector<8x32xf32> to vector<8x32xbf16>
      %64 = vector.shape_cast %63 : vector<8x32xbf16> to vector<8x4x8xbf16>
      %65 = tpu.transpose %64, [1, 0, 2] : vector<8x4x8xbf16> -> vector<4x8x8xbf16>
      "tpu.trace_start"() <{level = 10 : i32, message = "hqd,hkd->hqk"}> : () -> ()
      %cst_34 = arith.constant dense<0.000000e+00> : vector<4x8x8xf32>
      %66 = tpu.matmul %59, %62, %cst_34 {dimension_numbers = #tpu.dot_dimension_numbers<[2], [2], [1], [1], [0, 0, 0, 1, 1, 1], [0], [0]>} : vector<4x8x8xbf16>, vector<4x8x8xbf16>, vector<4x8x8xf32> -> vector<4x8x8xf32>
      "tpu.trace_stop"() : () -> ()
      %cst_35 = arith.constant 0.353553385 : f32
      %67 = vector.broadcast %cst_35 : f32 to vector<4x8x8xf32>
      %68 = arith.mulf %66, %67 : vector<4x8x8xf32>
      %69 = vector.broadcast %7 : vector<1x1x8xf32> to vector<4x8x8xf32>
      %70 = arith.addf %68, %69 : vector<4x8x8xf32>
      %cst_36 = arith.constant dense<0xFF800000> : vector<4x8xf32>
      %71 = vector.multi_reduction <maximumf>, %70, %cst_36 [2] : vector<4x8x8xf32> to vector<4x8xf32>
      %72 = vector.shape_cast %71 : vector<4x8xf32> to vector<4x8x1xf32>
      %73 = vector.broadcast %72 : vector<4x8x1xf32> to vector<4x8x8xf32>
      %74 = arith.subf %70, %73 : vector<4x8x8xf32>
      %75 = math.exp %74 : vector<4x8x8xf32>
      %cst_37 = arith.constant dense<0.000000e+00> : vector<4x8xf32>
      %76 = vector.multi_reduction <add>, %75, %cst_37 [2] : vector<4x8x8xf32> to vector<4x8xf32>
      %77 = vector.shape_cast %76 : vector<4x8xf32> to vector<4x8x1xf32>
      %78 = tpu.reciprocal %77 {approx = true} : vector<4x8x1xf32> -> vector<4x8x1xf32>
      %79 = vector.broadcast %78 : vector<4x8x1xf32> to vector<4x8x8xf32>
      %80 = arith.mulf %75, %79 : vector<4x8x8xf32>
      %81 = arith.truncf %80 : vector<4x8x8xf32> to vector<4x8x8xbf16>
      "tpu.trace_start"() <{level = 10 : i32, message = "hqk,hkd->hqd"}> : () -> ()
      %cst_38 = arith.constant dense<0.000000e+00> : vector<4x8x8xf32>
      %82 = tpu.matmul %81, %65, %cst_38 {dimension_numbers = #tpu.dot_dimension_numbers<[2], [1], [1], [2], [0, 0, 0, 1, 1, 2], [0], [0]>} : vector<4x8x8xbf16>, vector<4x8x8xbf16>, vector<4x8x8xf32> -> vector<4x8x8xf32>
      "tpu.trace_stop"() : () -> ()
      %83 = tpu.transpose %82, [1, 0, 2] : vector<4x8x8xf32> -> vector<8x4x8xf32>
      %84 = vector.shape_cast %83 : vector<8x4x8xf32> to vector<8x32xf32>
      %85 = arith.truncf %84 : vector<8x32xf32> to vector<8x32xbf16>
      %c0_39 = arith.constant 0 : index
      %c0_40 = arith.constant 0 : index
      %86 = vector.load %arg11[%c0_39, %c0_40] : memref<32x32xbf16, #tpu.memory_space<vmem>>, vector<32x32xbf16>
      %cst_41 = arith.constant dense<0.000000e+00> : vector<8x32xf32>
      %87 = tpu.matmul %85, %86, %cst_41 {dimension_numbers = #tpu.dot_dimension_numbers<[1], [0], [0], [1], [0, 0, 1, 1], [], []>} : vector<8x32xbf16>, vector<32x32xbf16>, vector<8x32xf32> -> vector<8x32xf32>
      %c0_42 = arith.constant 0 : index
      %c0_43 = arith.constant 0 : index
      %88 = vector.load %arg12[%c0_42, %c0_43] : memref<1x32xf32, #tpu.memory_space<vmem>>, vector<1x32xf32>
      %89 = vector.broadcast %88 : vector<1x32xf32> to vector<8x32xf32>
      %90 = arith.addf %87, %89 : vector<8x32xf32>
      %91 = arith.addf %arg23, %90 : vector<8x32xf32>
      %c0_44 = arith.constant 0 : index
      %c0_45 = arith.constant 0 : index
      %92 = vector.load %arg13[%c0_44, %c0_45] : memref<1x32xf32, #tpu.memory_space<vmem>>, vector<1x32xf32>
      %c0_46 = arith.constant 0 : index
      %c0_47 = arith.constant 0 : index
      %93 = vector.load %arg14[%c0_46, %c0_47] : memref<1x32xf32, #tpu.memory_space<vmem>>, vector<1x32xf32>
      %cst_48 = arith.constant dense<0.000000e+00> : vector<8xf32>
      %94 = vector.multi_reduction <add>, %91, %cst_48 [1] : vector<8x32xf32> to vector<8xf32>
      %95 = vector.shape_cast %94 : vector<8xf32> to vector<8x1xf32>
      %cst_49 = arith.constant 3.200000e+01 : f32
      %96 = vector.broadcast %cst_49 : f32 to vector<8x1xf32>
      %97 = arith.divf %95, %96 : vector<8x1xf32>
      %98 = vector.broadcast %97 : vector<8x1xf32> to vector<8x32xf32>
      %99 = arith.subf %91, %98 : vector<8x32xf32>
      %100 = arith.mulf %99, %99 : vector<8x32xf32>
      %cst_50 = arith.constant dense<0.000000e+00> : vector<8xf32>
      %101 = vector.multi_reduction <add>, %100, %cst_50 [1] : vector<8x32xf32> to vector<8xf32>
      %102 = vector.shape_cast %101 : vector<8xf32> to vector<8x1xf32>
      %cst_51 = arith.constant 3.200000e+01 : f32
      %103 = vector.broadcast %cst_51 : f32 to vector<8x1xf32>
      %104 = arith.divf %102, %103 : vector<8x1xf32>
      %105 = vector.broadcast %97 : vector<8x1xf32> to vector<8x32xf32>
      %106 = arith.subf %91, %105 : vector<8x32xf32>
      %cst_52 = arith.constant 9.99999996E-13 : f32
      %107 = vector.broadcast %cst_52 : f32 to vector<8x1xf32>
      %108 = arith.addf %104, %107 : vector<8x1xf32>
      %109 = math.rsqrt %108 : vector<8x1xf32>
      %110 = vector.broadcast %109 : vector<8x1xf32> to vector<8x32xf32>
      %111 = arith.mulf %106, %110 : vector<8x32xf32>
      %112 = vector.broadcast %92 : vector<1x32xf32> to vector<8x32xf32>
      %113 = arith.mulf %111, %112 : vector<8x32xf32>
      %114 = vector.broadcast %93 : vector<1x32xf32> to vector<8x32xf32>
      %115 = arith.addf %113, %114 : vector<8x32xf32>
      %116 = arith.truncf %115 : vector<8x32xf32> to vector<8x32xbf16>
      %c0_53 = arith.constant 0 : index
      %c0_54 = arith.constant 0 : index
      %117 = vector.load %arg15[%c0_53, %c0_54] : memref<32x64xbf16, #tpu.memory_space<vmem>>, vector<32x64xbf16>
      %cst_55 = arith.constant dense<0.000000e+00> : vector<8x64xf32>
      %118 = tpu.matmul %116, %117, %cst_55 {dimension_numbers = #tpu.dot_dimension_numbers<[1], [0], [0], [1], [0, 0, 1, 1], [], []>} : vector<8x32xbf16>, vector<32x64xbf16>, vector<8x64xf32> -> vector<8x64xf32>
      %c0_56 = arith.constant 0 : index
      %c0_57 = arith.constant 0 : index
      %119 = vector.load %arg16[%c0_56, %c0_57] : memref<1x64xf32, #tpu.memory_space<vmem>>, vector<1x64xf32>
      %120 = vector.broadcast %119 : vector<1x64xf32> to vector<8x64xf32>
      %121 = arith.addf %118, %120 : vector<8x64xf32>
      %122 = arith.mulf %121, %121 : vector<8x64xf32>
      %123 = arith.mulf %121, %122 : vector<8x64xf32>
      %cst_58 = arith.constant 4.471500e-02 : f32
      %124 = vector.broadcast %cst_58 : f32 to vector<8x64xf32>
      %125 = arith.mulf %124, %123 : vector<8x64xf32>
      %126 = arith.addf %121, %125 : vector<8x64xf32>
      %cst_59 = arith.constant 0.797884583 : f32
      %127 = vector.broadcast %cst_59 : f32 to vector<8x64xf32>
      %128 = arith.mulf %127, %126 : vector<8x64xf32>
      %129 = math.tanh %128 : vector<8x64xf32>
      %cst_60 = arith.constant 1.000000e+00 : f32
      %130 = vector.broadcast %cst_60 : f32 to vector<8x64xf32>
      %131 = arith.addf %130, %129 : vector<8x64xf32>
      %cst_61 = arith.constant 5.000000e-01 : f32
      %132 = vector.broadcast %cst_61 : f32 to vector<8x64xf32>
      %133 = arith.mulf %132, %131 : vector<8x64xf32>
      %134 = arith.mulf %121, %133 : vector<8x64xf32>
      %135 = arith.truncf %134 : vector<8x64xf32> to vector<8x64xbf16>
      %c0_62 = arith.constant 0 : index
      %c0_63 = arith.constant 0 : index
      %136 = vector.load %arg17[%c0_62, %c0_63] : memref<64x32xbf16, #tpu.memory_space<vmem>>, vector<64x32xbf16>
      %cst_64 = arith.constant dense<0.000000e+00> : vector<8x32xf32>
      %137 = tpu.matmul %135, %136, %cst_64 {dimension_numbers = #tpu.dot_dimension_numbers<[1], [0], [0], [1], [0, 0, 1, 1], [], []>} : vector<8x64xbf16>, vector<64x32xbf16>, vector<8x32xf32> -> vector<8x32xf32>
      %c0_65 = arith.constant 0 : index
      %c0_66 = arith.constant 0 : index
      %138 = vector.load %arg18[%c0_65, %c0_66] : memref<1x32xf32, #tpu.memory_space<vmem>>, vector<1x32xf32>
      %139 = vector.broadcast %138 : vector<1x32xf32> to vector<8x32xf32>
      %140 = arith.addf %137, %139 : vector<8x32xf32>
      %141 = arith.addf %115, %140 : vector<8x32xf32>
      %c0_67 = arith.constant 0 : index
      %c0_68 = arith.constant 0 : index
      %142 = vector.load %arg19[%c0_67, %c0_68] : memref<1x32xf32, #tpu.memory_space<vmem>>, vector<1x32xf32>
      %c0_69 = arith.constant 0 : index
      %c0_70 = arith.constant 0 : index
      %143 = vector.load %arg20[%c0_69, %c0_70] : memref<1x32xf32, #tpu.memory_space<vmem>>, vector<1x32xf32>
      %cst_71 = arith.constant dense<0.000000e+00> : vector<8xf32>
      %144 = vector.multi_reduction <add>, %141, %cst_71 [1] : vector<8x32xf32> to vector<8xf32>
      %145 = vector.shape_cast %144 : vector<8xf32> to vector<8x1xf32>
      %cst_72 = arith.constant 3.200000e+01 : f32
      %146 = vector.broadcast %cst_72 : f32 to vector<8x1xf32>
      %147 = arith.divf %145, %146 : vector<8x1xf32>
      %148 = vector.broadcast %147 : vector<8x1xf32> to vector<8x32xf32>
      %149 = arith.subf %141, %148 : vector<8x32xf32>
      %150 = arith.mulf %149, %149 : vector<8x32xf32>
      %cst_73 = arith.constant dense<0.000000e+00> : vector<8xf32>
      %151 = vector.multi_reduction <add>, %150, %cst_73 [1] : vector<8x32xf32> to vector<8xf32>
      %152 = vector.shape_cast %151 : vector<8xf32> to vector<8x1xf32>
      %cst_74 = arith.constant 3.200000e+01 : f32
      %153 = vector.broadcast %cst_74 : f32 to vector<8x1xf32>
      %154 = arith.divf %152, %153 : vector<8x1xf32>
      %155 = vector.broadcast %147 : vector<8x1xf32> to vector<8x32xf32>
      %156 = arith.subf %141, %155 : vector<8x32xf32>
      %cst_75 = arith.constant 9.99999996E-13 : f32
      %157 = vector.broadcast %cst_75 : f32 to vector<8x1xf32>
      %158 = arith.addf %154, %157 : vector<8x1xf32>
      %159 = math.rsqrt %158 : vector<8x1xf32>
      %160 = vector.broadcast %159 : vector<8x1xf32> to vector<8x32xf32>
      %161 = arith.mulf %156, %160 : vector<8x32xf32>
      %162 = vector.broadcast %142 : vector<1x32xf32> to vector<8x32xf32>
      %163 = arith.mulf %161, %162 : vector<8x32xf32>
      %164 = vector.broadcast %143 : vector<1x32xf32> to vector<8x32xf32>
      %165 = arith.addf %163, %164 : vector<8x32xf32>
      scf.yield %165 : vector<8x32xf32>
    }
    %37 = arith.truncf %36 : vector<8x32xf32> to vector<8x32xbf16>
    %c0_16 = arith.constant 0 : index
    %c0_17 = arith.constant 0 : index
    %c0_18 = arith.constant 0 : index
    %38 = vector.load %arg21[%c0_16, %c0_17, %c0_18] : memref<1x8x32xbf16, #tpu.memory_space<vmem>>, vector<1x8x32xbf16>
    %39 = vector.shape_cast %38 : vector<1x8x32xbf16> to vector<8x32xbf16>
    %40 = vector.shape_cast %37 : vector<8x32xbf16> to vector<1x8x32xbf16>
    tpu.vector_store %arg21[%c0_16, %c0_17, %c0_18], %40 {strides = array<i32>} : memref<1x8x32xbf16, #tpu.memory_space<vmem>>, vector<1x8x32xbf16>,
    return
  }
  func.func @transform_0(%arg0: i32) -> (i32, i32, i32) {
    %c0_i32 = arith.constant 0 : i32
    %c0_i32_0 = arith.constant 0 : i32
    %c0_i32_1 = arith.constant 0 : i32
    return %arg0, %c0_i32, %c0_i32_0 : i32, i32, i32
  }
  func.func @transform_1(%arg0: i32) -> (i32, i32, i32) {
    %c0_i32 = arith.constant 0 : i32
    %c0_i32_0 = arith.constant 0 : i32
    %c0_i32_1 = arith.constant 0 : i32
    return %arg0, %c0_i32, %c0_i32_0 : i32, i32, i32
  }
  func.func @transform_2(%arg0: i32) -> (i32, i32) {
    %c0_i32 = arith.constant 0 : i32
    %c0_i32_0 = arith.constant 0 : i32
    %c0_i32_1 = arith.constant 0 : i32
    return %c0_i32, %c0_i32_0 : i32, i32
  }
  func.func @transform_3(%arg0: i32) -> (i32, i32) {
    %c0_i32 = arith.constant 0 : i32
    %c0_i32_0 = arith.constant 0 : i32
    %c0_i32_1 = arith.constant 0 : i32
    return %c0_i32, %c0_i32_0 : i32, i32
  }
  func.func @transform_4(%arg0: i32) -> (i32, i32) {
    %c0_i32 = arith.constant 0 : i32
    %c0_i32_0 = arith.constant 0 : i32
    %c0_i32_1 = arith.constant 0 : i32
    return %c0_i32, %c0_i32_0 : i32, i32
  }
  func.func @transform_5(%arg0: i32) -> (i32, i32) {
    %c0_i32 = arith.constant 0 : i32
    %c0_i32_0 = arith.constant 0 : i32
    %c0_i32_1 = arith.constant 0 : i32
    return %c0_i32, %c0_i32_0 : i32, i32
  }
  func.func @transform_6(%arg0: i32) -> (i32, i32) {
    %c0_i32 = arith.constant 0 : i32
    %c0_i32_0 = arith.constant 0 : i32
    %c0_i32_1 = arith.constant 0 : i32
    return %c0_i32, %c0_i32_0 : i32, i32
  }
  func.func @transform_7(%arg0: i32) -> (i32, i32) {
    %c0_i32 = arith.constant 0 : i32
    %c0_i32_0 = arith.constant 0 : i32
    %c0_i32_1 = arith.constant 0 : i32
    return %c0_i32, %c0_i32_0 : i32, i32
  }
  func.func @transform_8(%arg0: i32) -> (i32, i32) {
    %c0_i32 = arith.constant 0 : i32
    %c0_i32_0 = arith.constant 0 : i32
    %c0_i32_1 = arith.constant 0 : i32
    return %c0_i32, %c0_i32_0 : i32, i32
  }
  func.func @transform_9(%arg0: i32) -> (i32, i32) {
    %c0_i32 = arith.constant 0 : i32
    %c0_i32_0 = arith.constant 0 : i32
    %c0_i32_1 = arith.constant 0 : i32
    return %c0_i32, %c0_i32_0 : i32, i32
  }
  func.func @transform_10(%arg0: i32) -> (i32, i32) {
    %c0_i32 = arith.constant 0 : i32
    %c0_i32_0 = arith.constant 0 : i32
    %c0_i32_1 = arith.constant 0 : i32
    return %c0_i32, %c0_i32_0 : i32, i32
  }
  func.func @transform_11(%arg0: i32) -> (i32, i32) {
    %c0_i32 = arith.constant 0 : i32
    %c0_i32_0 = arith.constant 0 : i32
    %c0_i32_1 = arith.constant 0 : i32
    return %c0_i32, %c0_i32_0 : i32, i32
  }
  func.func @transform_12(%arg0: i32) -> (i32, i32) {
    %c0_i32 = arith.constant 0 : i32
    %c0_i32_0 = arith.constant 0 : i32
    %c0_i32_1 = arith.constant 0 : i32
    return %c0_i32, %c0_i32_0 : i32, i32
  }
  func.func @transform_13(%arg0: i32) -> (i32, i32) {
    %c0_i32 = arith.constant 0 : i32
    %c0_i32_0 = arith.constant 0 : i32
    %c0_i32_1 = arith.constant 0 : i32
    return %c0_i32, %c0_i32_0 : i32, i32
  }
  func.func @transform_14(%arg0: i32) -> (i32, i32) {
    %c0_i32 = arith.constant 0 : i32
    %c0_i32_0 = arith.constant 0 : i32
    %c0_i32_1 = arith.constant 0 : i32
    return %c0_i32, %c0_i32_0 : i32, i32
  }
  func.func @transform_15(%arg0: i32) -> (i32, i32) {
    %c0_i32 = arith.constant 0 : i32
    %c0_i32_0 = arith.constant 0 : i32
    %c0_i32_1 = arith.constant 0 : i32
    return %c0_i32, %c0_i32_0 : i32, i32
  }
  func.func @transform_16(%arg0: i32) -> (i32, i32) {
    %c0_i32 = arith.constant 0 : i32
    %c0_i32_0 = arith.constant 0 : i32
    %c0_i32_1 = arith.constant 0 : i32
    return %c0_i32, %c0_i32_0 : i32, i32
  }
  func.func @transform_17(%arg0: i32) -> (i32, i32) {
    %c0_i32 = arith.constant 0 : i32
    %c0_i32_0 = arith.constant 0 : i32
    %c0_i32_1 = arith.constant 0 : i32
    return %c0_i32, %c0_i32_0 : i32, i32
  }
  func.func @transform_18(%arg0: i32) -> (i32, i32) {
    %c0_i32 = arith.constant 0 : i32
    %c0_i32_0 = arith.constant 0 : i32
    %c0_i32_1 = arith.constant 0 : i32
    return %c0_i32, %c0_i32_0 : i32, i32
  }
  func.func @transform_19(%arg0: i32) -> (i32, i32) {
    %c0_i32 = arith.constant 0 : i32
    %c0_i32_0 = arith.constant 0 : i32
    %c0_i32_1 = arith.constant 0 : i32
    return %c0_i32, %c0_i32_0 : i32, i32
  }
  func.func @transform_20(%arg0: i32) -> (i32, i32, i32) {
    %c0_i32 = arith.constant 0 : i32
    %c0_i32_0 = arith.constant 0 : i32
    %c0_i32_1 = arith.constant 0 : i32
    return %arg0, %c0_i32, %c0_i32_0 : i32, i32, i32
  }
}

</mosaic_0001>

<bundles_post_ra>
// kernel: albert_forward.1
= control target key start
LH: loop header
LB: loop body
LE: loop exit
PB: predicated region body
PF: predicated region fallthrough
CT: control target
= control target key end

     0   :  { %s3242_s0 = inlined_call_operand.vmem [shape: s32[2,1,8], index: 0, kind: input, shape index: {}]   ;;  %s3243_s1 = inlined_call_operand.vmem [shape: bf16[2,8,32], index: 1, kind: input, shape index: {}]   ;;  %s3244_s2 = inlined_call_operand.vmem [shape: f32[1,32], index: 2, kind: input, shape index: {}]   ;;  %s3245_s3 = inlined_call_operand.vmem [shape: f32[1,32], index: 3, kind: input, shape index: {}]   ;;  %s3246_s4 = inlined_call_operand.vmem [shape: bf16[32,32], index: 4, kind: input, shape index: {}]   ;;  %s3247_s5 = inlined_call_operand.vmem [shape: f32[1,32], index: 5, kind: input, shape index: {}]   ;;  %s3248_s6 = inlined_call_operand.vmem [shape: bf16[32,32], index: 6, kind: input, shape index: {}]   ;;  %s3249_s7 = inlined_call_operand.vmem [shape: f32[1,32], index: 7, kind: input, shape index: {}]   ;;  %s3250_s8 = inlined_call_operand.vmem [shape: bf16[32,32], index: 8, kind: input, shape index: {}]   ;;  %s3251_s9 = inlined_call_operand.vmem [shape: f32[1,32], index: 9, kind: input, shape index: {}]   ;;  %s3252_s10 = inlined_call_operand.vmem [shape: bf16[32,32], index: 10, kind: input, shape index: {}]   ;;  %s3253_s11 = inlined_call_operand.vmem [shape: f32[1,32], index: 11, kind: input, shape index: {}]   ;;  %s3254_s12 = inlined_call_operand.vmem [shape: f32[1,32], index: 12, kind: input, shape index: {}]   ;;  %s3255_s13 = inlined_call_operand.vmem [shape: f32[1,32], index: 13, kind: input, shape index: {}]   ;;  %s3256_s14 = inlined_call_operand.vmem [shape: bf16[32,64], index: 14, kind: input, shape index: {}]   ;;  %s3257_s15 = inlined_call_operand.vmem [shape: f32[1,64], index: 15, kind: input, shape index: {}]   ;;  %s3258_s16 = inlined_call_operand.vmem [shape: bf16[64,32], index: 16, kind: input, shape index: {}]   ;;  %s3259_s17 = inlined_call_operand.vmem [shape: f32[1,32], index: 17, kind: input, shape index: {}]   ;;  %s3260_s18 = inlined_call_operand.vmem [shape: f32[1,32], index: 18, kind: input, shape index: {}]   ;;  %s3261_s19 = inlined_call_operand.vmem [shape: f32[1,32], index: 19, kind: input, shape index: {}]   ;;  %s3262_s20 = inlined_call_operand.hbm [shape: bf16[2,8,32], index: 20, kind: output, shape index: {}]  }
   0x1   :  { %3269 = sst [smem:[#allocation9_spill]] %s3242_s0 }
   0x2   :  { %3270 = sst [smem:[#allocation10_spill]] %s3243_s1 }
   0x3   :  { %3271 = sst [smem:[#allocation11_spill]] %s3244_s2 }
   0x4   :  { %3272 = sst [smem:[#allocation12_spill]] %s3245_s3 }
   0x5   :  { %3273 = sst [smem:[#allocation13_spill]] %s3246_s4 }
   0x6   :  { %3274 = sst [smem:[#allocation14_spill]] %s3247_s5 }
   0x7   :  { %3275 = sst [smem:[#allocation15_spill]] %s3248_s6 }
   0x8   :  { %3276 = sst [smem:[#allocation16_spill]] %s3249_s7 }
   0x9   :  { %3277 = sst [smem:[#allocation17_spill]] %s3250_s8 }
   0xa   :  { %25 = vsyncpa [#allocation3], 0 }
   0xb   :  { %27 = vsyncpa [#allocation3 + $0x1], 0  ;;  %s2839_s1 = smov 0   ;;  %s2841_s22 = smov 0  }
   0xc   :  { %s2843_s23 = smov 0   ;;  %s2845_s24 = smov 0  }
   0xd LB: > { %3278 = sst [smem:[#allocation5_spill]] %s2699_s1  ;;  %s2860_s2 = sadd.s32 4294967295, %s2711_s24   ;;  %s2711_s24 = sphi %s2845_s24, %s3298_s24   ;;  %s2707_s23 = sphi %s2843_s23, %s3300_s23   ;;  %s2703_s22 = sphi %s2841_s22, %s3302_s22   ;;  %s2699_s1 = sphi %s2839_s1, %s3301_s1  }
   0xe   : > { %3279 = sst [smem:[#allocation6_spill]] %s2707_s23  ;;  %s2348_s25 = sadd.s32 4294967294, %s2711_s24  }
   0xf   : > { %s2864_s3 = sadd.s32 1, %s2711_s24   ;;  %s470_s26 = sadd.s32 1, %s2707_s23 }
  0x10   : > { %3280 = sst [smem:[#allocation7_spill]] %s2864_s3  ;;  %s467_s27 = ssub.s32 %s2711_s24, %s2864_s3 }
  0x11   : > { %p480_p0 = scmp.ne.s32.totalorder %s2707_s23, %s2703_s22  ;;  %p468_p1 = scmp.eq.s32.totalorder %s467_s27, 0 }
  0x12   : > { %p481_p2 = scmp.eq.s32.totalorder %s2860_s2, 1  ;;  %p486_p3 = scmp.ne.s32.totalorder %s2703_s22, %s2699_s1 }
  0x13   : > { %p487_p4 = scmp.eq.s32.totalorder %s2348_s25, 1  ;;  %p2351_p7 = scmp.ge.s32.totalorder %s2711_s24, 1 }
  0x14   : > { %s2875_s28 = scalar_select %p468_p1, %s2707_s23, %s470_s26  }
  0x15   : > { %p2877_p5 = por %p481_p2, %p480_p0  ;;  %p2881_p6 = por %p487_p4, %p486_p3 }
  0x16   : > { %3281 = sst [smem:[#allocation8_spill]] %s2875_s28  ;;  %p572_p8 = scmp.lt.s32.totalorder %s2711_s24, 3 }
  0x18   : > { %p573_p9 = pnand %p2351_p7, %p572_p8 }
  0x19   : > { %p632_p10 = scmp.lt.s32.totalorder (!%p573_p9), %s2860_s2, 1  ;;  %s3284_s26 = sld [smem:[#allocation9_spill]] (!%p573_p9)  ;;  %vm647_vm0 = vcmask (!%p573_p9), 261120   ;;  %v2721_v3 = vmov (!%p573_p9), 0.0  }
  0x1a   : > { %576 = sbr.rel (%p573_p9) target bundleno = 2992 (0xbb0), region = 100  ;;  %s3285_s3 = sld [smem:[#allocation10_spill]] (!%p573_p9) }
  0x1b   : > { %s3268_s23 = sand.u32 (!%p573_p9), 1, %s2703_s22   ;;  %s3287_s25 = sld [smem:[#allocation12_spill]] (!%p573_p9) }
  0x21   : > { %s633_s30 = scalar_select %p632_p10, %s2860_s2, 1  ;;  %v2355_v17 = vld [vmem:[%s3287_s25] ss:$0 sm:$0xff] }
  0x23   : > { %s2353_s0 = sshll.u32 %s633_s30, 2  ;;  %s634_s27 = scalar_lea.vmem %s3284_s26, %s633_s30 }
  0x24   : > { %s638_s1 = scalar_lea.vmem %s3285_s3, %s2353_s0  ;;  %v640_v0 = vld [vmem:[%s634_s27] sm:$0x1]  ;;  %s2902_s3 = sshll.u32 %s3268_s23, 2 }
  0x25   : > { %v643_v1 = vld [vmem:[%s638_s1] sm:$0xf]  ;;  %vm641_vm1 = vcmp.eq.s32.totalorder %v640_v0, 0  ;;  %s3286_s30 = sld [smem:[#allocation11_spill]]  ;;  %s2913_s27 = smov 0  }
  0x26   : > { %v644_v2 = vunpack.c.l.bf16 %v643_v1  ;;  %v2895_v4 = vsel %vm641_vm1, -1e+09, %v2721_v3 }
  0x28   : > { %v648_v5 = vsel %vm647_vm0, %v644_v2, 0.0 }
  0x29   : > { %649 = vadd.xlane.f32.xlu0 %v648_v5 }
  0x2b   : > { %v2354_v15 = vld [vmem:[%s3286_s30] ss:$0 sm:$0xff] }
  0xb6   : > { %v650_v6 = vpop.xlane.xlu0 %649 }
  0xb7   : > { %v652_v7 = vmul.f32 0.03125, %v650_v6 }
  0xb9   : > { %v653_v8 = vsub.f32 %v644_v2, %v652_v7 }
  0xbb   : > { %v654_v9 = vmul.f32 %v653_v8, %v653_v8 }
  0xbd   : > { %v655_v10 = vsel %vm647_vm0, %v654_v9, 0.0 }
  0xbe   : > { %656 = vadd.xlane.f32.xlu0 %v655_v10 }
 0x14b   : > { %v657_v11 = vpop.xlane.xlu0 %656 }
 0x14c   : > { %v658_v12 = vmul.f32 0.03125, %v657_v11 }
 0x14e   : > { %v659_v13 = vadd.f32 1e-12, %v658_v12 }
 0x150   : > { %2603 = vrsqrt.f32 %v659_v13 }
 0x15a   : > { %v2604_v14 = vpop.eup %2603 }
 0x15b   : > { %v661_v16 = vmul.f32 %v2604_v14, %v653_v8 }
 0x15d   : > { %v668_v18 = vmul.f32 %v2354_v15, %v661_v16 }
 0x15f   : > { %v675_v19 = vadd.f32 %v2355_v17, %v668_v18  }
 0x160 LB: >> { %s3288_s6 = sld [smem:[#allocation15_spill]]  ;;  %v2722_v21 = vmov 0.0   ;;  %s3289_s21 = sld [smem:[#allocation13_spill]]  ;;  %vm2723_vm2 = vmmov 0   ;;  %v683_v25 = vpack.c.bf16 %v2715_v19, %v2715_v19  ;;  %v2727_v42 = vmov 1983009808   ;;  %s2719_s27 = sphi %s2913_s27, %s681_s27   ;;  %v2715_v19 = vphi %v675_v19, %v3293_v19  }
 0x161   : >> { %2444 = vmatprep.subr.bf16.mxu1 %v2722_v21  ;;  %2436 = vmatprep.subr.bf16.mxu0 %v2722_v21  ;;  %s3290_s7 = sld [smem:[#allocation16_spill]]  ;;  %s3291_s5 = sld [smem:[#allocation14_spill]]  ;;  %v885_v43 = vunpack.c.l.s4 %v2727_v42  ;;  %v887_v44 = vlaneseq  ;;  %v2728_v45 = vmov 1934713408   ;;  %v2729_v0 = vmov 0  }
 0x162   : >> { %2448 = vmatprep.mubr.msk.bf16.mxu1 %vm2723_vm2, %v2722_v21  ;;  %2440 = vmatprep.mubr.msk.bf16.mxu0 %vm2723_vm2, %v2722_v21  ;;  %s2724_s1 = smov 104   ;;  %s2725_s28 = smov 120   ;;  %v902_v46 = vunpack.c.l.s4 %v2728_v45  ;;  %vm1383_vm3 = vcmask 64512   ;;  %vm1633_vm4 = vcmask 1043456   ;;  %vm1964_vm5 = vcmask 130048  }
 0x163   : >> { %s2726_s23 = smov 112   ;;  %s3292_s8 = sld [smem:[#allocation17_spill]]  ;;  %v886_v47 = vunpack.c.0.s8 %v885_v43  ;;  %v2974_v48 = vshrl.u32 %v887_v44, 7  ;;  %vm1966_vm6 = vcmask 195584   ;;  %vm2181_vm7 = vcmask 523264  }
 0x164   : >> { %v903_v49 = vunpack.c.0.s8 %v902_v46  ;;  %s2730_s25 = smov 16   ;;  %s2731_s26 = smov 8  }
 0x165   : >> { %v2977_v50 = vsub.s32 %v886_v47, %v2974_v48  ;;  %s2732_s30 = smov 24   ;;  %s681_s27 = sadd.s32 1, %s2719_s27  }
 0x166   : >> { %v2605_v20 = vld [vmem:[%s3288_s6] sm:$0xff]   ;;  %v2607_v23 = vld [vmem:[%s3288_s6 + $0x8] sm:$0xff]   ;;  %v2981_v54 = vsub.s32 %v903_v49, %v2974_v48  ;;  %p678_p11 = scmp.ge.s32.totalorder %s681_s27, 2  }
 0x167   : >> { %v2606_v22 = vld [vmem:[%s3289_s21] sm:$0xff]   ;;  %2445 = vmatpush3.bf16.msra.mxu1 %v2605_v20  ;;  %v2608_v24 = vld [vmem:[%s3289_s21 + $0x8] sm:$0xff]   ;;  %vm2256_vm8 = vcmask (%p678_p11), 257024   ;;  %s2397_s0 = sshll.u32 (%p678_p11), %s2860_s2, 6  ;;  %s3296_s27 = sand.u32 (%p678_p11), 1, %s2703_s22  }
 0x168   : >> { %2446 = vmatprep.subr.bf16.mxu1 %v2722_v21  ;;  %2437 = vmatpush3.bf16.msra.mxu0 %v2606_v22  ;;  %v2360_v26 = vld [vmem:[%s3290_s7] ss:$0 sm:$0xff]  ;;  %s2733_s7 = smov (%p678_p11), [#allocation2]  }
 0x169   : >> { %2438 = vmatprep.subr.bf16.mxu0 %v2722_v21  ;;  %v2356_v27 = vld [vmem:[%s3291_s5] ss:$0 sm:$0xff]  ;;  %v2610_v41 = vld [vmem:[%s3292_s8 + $0x8] sm:$0xff]  }
 0x16a   : >> { %v2609_v40 = vld [vmem:[%s3292_s8] sm:$0xff]   ;;  %s2645_s8 = sshll.u32 (%p678_p11), %s2733_s7, 4  ;;  %s2646_s8 = int_to_ptr.vmem [resolvable:$false] %s2645_s8 }
 0x16b   : >> { %2447 = vmatpush3.bf16.msra.mxu1 %v2607_v23  ;;  %s2647_s2 = scalar_lea.vmem (%p678_p11), %s2646_s8, 128 }
 0x16c   : >> { %2439 = vmatpush3.bf16.msra.mxu0 %v2608_v24  ;;  %2460 = vmatprep.subr.bf16.mxu1 %v2722_v21 }
 0x16d   : >> { %2452 = vmatprep.subr.bf16.mxu0 %v2722_v21 }
 0x16e   : >> { %2449 = vmatmul.mubr.msk.bf16.vlgmr.msra.gmra.mrb[0].mxu1 %vm647_vm0, %v683_v25 }
 0x16f   : >> { %2441 = vmatmul.mubr.msk.bf16.vlgmr.msra.gmra.mrb[0].mxu0 %vm647_vm0, %v683_v25  ;;  %2462 = vmatprep.mubr.msk.bf16.mxu1 %vm2723_vm2, %v2722_v21 }
 0x170   : >> { %2456 = vmatprep.mubr.msk.bf16.mxu0 %vm2723_vm2, %v2722_v21  ;;  %2453 = vmatpush3.bf16.msra.mxu0 %v2609_v40 }
 0x171   : >> { %2454 = vmatprep.subr.bf16.mxu0 %v2722_v21 }
 0x174   : >> { %2455 = vmatpush3.bf16.msra.mxu0 %v2610_v41 }
 0x175   : >> { %2466 = vmatprep.subr.bf16.mxu0 %v2722_v21 }
 0x177   : >> { %2457 = vmatmul.mubr.msk.bf16.vlgmr.msra.gmra.mrb[4].mxu0 %vm647_vm0, %v683_v25 }
 0x178   : >> { %2468 = vmatprep.mubr.msk.bf16.mxu0 %vm2723_vm2, %v2722_v21 }
 0x241   : >> { %v807_v28 = vpop.f32.mrb[0].mxu1 }
 0x242   : >> { %v808_v29 = vadd.f32 %v2360_v26, %v807_v28  ;;  %v2450_v30 = vpop.f32.mrb[1].mxu1  ;;  %v744_v31 = vpop.f32.mrb[0].mxu0 }
 0x243   : >> { %v810_v32 = vpop.f32.mrb[2].mxu1  ;;  %v745_v33 = vadd.f32 %v2356_v27, %v744_v31  ;;  %v2442_v34 = vpop.f32.mrb[1].mxu0 }
 0x244   : >> { %v1045_v35 = vpack.c.bf16 %v808_v29, %v808_v29  ;;  %v2451_v36 = vpop.f32.mrb[3].mxu1  ;;  %v747_v37 = vpop.f32.mrb[2].mxu0 }
 0x245   : >> { %v2443_v38 = vpop.f32.mrb[3].mxu0  ;;  %v876_v39 = vpack.c.bf16 %v745_v33, %v745_v33 }
 0x246   : >> { %1051 = vrot.lane.b32.xlu1 %v1045_v35, %s2724_s1  ;;  %1047 = vrot.lane.b32.xlu0 %v1045_v35, %s2725_s28  ;;  %v1059_v63 = vrot.slane %v1045_v35, %v2977_v50 }
 0x247   : >> { %v890_v8 = vrot.slane %v876_v39, %v2977_v50 }
 0x24a   : >> { %1049 = vrot.lane.b32.xlu0 %v1045_v35, %s2726_s23  ;;  %878 = vrot.lane.b32.xlu1 %v876_v39, %s2725_s28 }
 0x24e   : >> { %880 = vrot.lane.b32.xlu0 %v876_v39, %s2726_s23  ;;  %882 = vrot.lane.b32.xlu1 %v876_v39, %s2724_s1 }
 0x2b8   : >> { %v1052_v51 = vpop.permute.xlu1 %1051  ;;  %v1048_v52 = vpop.permute.xlu0 %1047 }
 0x2b9   : >> { %v1101_v53 = vrot.slane %v1052_v51, %v2977_v50  ;;  %v1093_v55 = vrot.slane %v1048_v52, %v2977_v50 }
 0x2bb   : >> { %v1102_v56 = vcombine.low %v1093_v55, %v1101_v53  ;;  %v1103_v57 = vcombine.high %v1093_v55, %v1101_v53 }
 0x2bc   : >> { %v1050_v58 = vpop.permute.xlu0 %1049  ;;  %v879_v59 = vpop.permute.xlu1 %878 }
 0x2bd   : >> { %v1110_v60 = vrot.slane %v1102_v56, %v2981_v54  ;;  %v1117_v61 = vrot.slane %v1103_v57, %v2981_v54  ;;  %v1067_v62 = vrot.slane %v1050_v58, %v2977_v50  ;;  %v924_v3 = vrot.slane %v879_v59, %v2977_v50 }
 0x2bf   : >> { %v1118_v1 = vcombine.high %v1110_v60, %v2729_v0  ;;  %v1119_v2 = vcombine.high %v1117_v61, %v2729_v0  ;;  %v1068_v5 = vcombine.low %v1059_v63, %v1067_v62  ;;  %v1069_v6 = vcombine.high %v1059_v63, %v1067_v62 }
 0x2c0   : >> { %v881_v7 = vpop.permute.xlu0 %880  ;;  %v883_v9 = vpop.permute.xlu1 %882  ;;  %v1125_v10 = vshrl.u32 %v1110_v60, 16  ;;  %v1141_v11 = vshrl.u32 %v1117_v61, 16 }
 0x2c1   : >> { %v898_v12 = vrot.slane %v881_v7, %v2977_v50  ;;  %v932_v13 = vrot.slane %v883_v9, %v2977_v50  ;;  %v1133_v14 = vshrl.u32 %v1118_v1, 16  ;;  %v1149_v15 = vshrl.u32 %v1119_v2, 16 }
 0x2c2   : >> { %v1076_v16 = vrot.slane %v1068_v5, %v2981_v54  ;;  %v1083_v17 = vrot.slane %v1069_v6, %v2981_v54 }
 0x2c3   : >> { %v899_v18 = vcombine.low %v890_v8, %v898_v12  ;;  %v900_v20 = vcombine.high %v890_v8, %v898_v12  ;;  %v933_v22 = vcombine.low %v924_v3, %v932_v13  ;;  %v934_v23 = vcombine.high %v924_v3, %v932_v13 }
 0x2c4   : >> { %v1084_v24 = vcombine.high %v1076_v16, %v2729_v0  ;;  %v1085_v25 = vcombine.high %v1083_v17, %v2729_v0  ;;  %v1122_v26 = vpack.i.b16 %v1110_v60, %v1076_v16  ;;  %v1124_v27 = vshrl.u32 %v1076_v16, 16 }
 0x2c5   : >> { %v1138_v28 = vpack.i.b16 %v1117_v61, %v1083_v17  ;;  %v1140_v29 = vshrl.u32 %v1083_v17, 16  ;;  %v907_v30 = vrot.slane %v899_v18, %v2981_v54  ;;  %v914_v31 = vrot.slane %v900_v20, %v2981_v54 }
 0x2c6   : >> { %v1126_v32 = vpack.i.b16 %v1125_v10, %v1124_v27  ;;  %v1130_v33 = vpack.i.b16 %v1118_v1, %v1084_v24  ;;  %v1132_v34 = vshrl.u32 %v1084_v24, 16  ;;  %v1146_v35 = vpack.i.b16 %v1119_v2, %v1085_v25 }
 0x2c7   : >> { %v1142_v36 = vpack.i.b16 %v1141_v11, %v1140_v29  ;;  %v1148_v37 = vshrl.u32 %v1085_v25, 16  ;;  %v1152_v38 = vcombine.low %v1122_v26, %v1138_v28  ;;  %v915_v39 = vcombine.high %v907_v30, %v2729_v0 }
 0x2c8   : >> { %v1134_v40 = vpack.i.b16 %v1133_v14, %v1132_v34  ;;  %v1160_v41 = vcombine.low %v1130_v33, %v1146_v35  ;;  %v916_v42 = vcombine.high %v914_v31, %v2729_v0  ;;  %v955_v46 = vshrl.u32 %v907_v30, 16 }
 0x2c9   : >> { %v1150_v43 = vpack.i.b16 %v1149_v15, %v1148_v37  ;;  %v1159_v44 = vrot.slane %v1152_v38, %v2977_v50  ;;  %v1177_v45 = vcombine.low %v1126_v32, %v1142_v36  ;;  %v963_v47 = vshrl.u32 %v915_v39, 16 }
 0x2ca   : >> { %v971_v49 = vshrl.u32 %v914_v31, 16  ;;  %v941_v51 = vrot.slane %v933_v22, %v2981_v54  ;;  %v948_v52 = vrot.slane %v934_v23, %v2981_v54  ;;  %v979_v55 = vshrl.u32 %v916_v42, 16 }
 0x2cb   : >> { %v1185_v53 = vcombine.low %v1134_v40, %v1150_v43  ;;  %v1167_v56 = vrot.slane %v1160_v41, %v2977_v50  ;;  %v1184_v57 = vrot.slane %v1177_v45, %v2977_v50 }
 0x2cc   : >> { %v949_v58 = vcombine.high %v941_v51, %v2729_v0  ;;  %v950_v59 = vcombine.high %v948_v52, %v2729_v0  ;;  %v953_v60 = vpack.i.b16 %v941_v51, %v907_v30  ;;  %v956_v61 = vshrl.u32 %v941_v51, 16 }
 0x2cd   : >> { %v969_v62 = vpack.i.b16 %v948_v52, %v914_v31  ;;  %v972_v63 = vshrl.u32 %v948_v52, 16  ;;  %v1168_v1 = vcombine.low %v1159_v44, %v1167_v56  ;;  %v1192_v2 = vrot.slane %v1185_v53, %v2977_v50  ;;  %v870_v56 = vpop.f32.mrb[4].mxu0 }
 0x2ce   : >> { %v957_v3 = vpack.i.b16 %v956_v61, %v955_v46  ;;  %v961_v5 = vpack.i.b16 %v949_v58, %v915_v39  ;;  %v964_v6 = vshrl.u32 %v949_v58, 16  ;;  %v977_v7 = vpack.i.b16 %v950_v59, %v916_v42 }
 0x2cf   : >> { %v973_v8 = vpack.i.b16 %v972_v63, %v971_v49  ;;  %v980_v9 = vshrl.u32 %v950_v59, 16  ;;  %v983_v10 = vcombine.low %v953_v60, %v969_v62  ;;  %v1175_v11 = vrot.slane %v1168_v1, %v2981_v54 }
 0x2d0   : >> { %v965_v12 = vpack.i.b16 %v964_v6, %v963_v47  ;;  %v991_v13 = vcombine.low %v961_v5, %v977_v7  ;;  %v1193_v14 = vcombine.low %v1184_v57, %v1192_v2  ;;  %v2458_v57 = vpop.f32.mrb[5].mxu0  ;;  %v1575_v60 = vsub.s32 0, %v2974_v48 }
 0x2d1   : >> { %v981_v15 = vpack.i.b16 %v980_v9, %v979_v55  ;;  %v1008_v16 = vcombine.low %v957_v3, %v973_v8  ;;  %v990_v17 = vrot.slane %v983_v10, %v2977_v50  ;;  %v1205_v23 = vshrl.u32 %v1175_v11, 16  ;;  %v873_v58 = vpop.f32.mrb[6].mxu0 }
 0x2d2   : >> { %v998_v18 = vrot.slane %v991_v13, %v2977_v50  ;;  %v1200_v20 = vrot.slane %v1193_v14, %v2981_v54  ;;  %v1176_v32 = vcombine.high %v1175_v11, %v2729_v0  ;;  %v2459_v59 = vpop.f32.mrb[7].mxu0  ;;  %v1576_v61 = vrot.slane %v2895_v4, %v1575_v60 }
 0x2d3   : >> { %v1016_v22 = vcombine.low %v965_v12, %v981_v15  ;;  %v1015_v28 = vrot.slane %v1008_v16, %v2977_v50 }
 0x2d4   : >> { %v999_v24 = vcombine.low %v990_v17, %v998_v18  ;;  %v1204_v25 = vpack.i.b16 %v1200_v20, %v1175_v11  ;;  %v1206_v26 = vshrl.u32 %v1200_v20, 16  ;;  %v1201_v27 = vcombine.high %v1200_v20, %v2729_v0 }
 0x2d5   : >> { %v1023_v29 = vrot.slane %v1016_v22, %v2977_v50  ;;  %v1211_v39 = vshrl.u32 %v1176_v32, 16 }
 0x2d6   : >> { %v1388_v30 = vsel %vm1383_vm3, %v1204_v25, 0  ;;  %v1207_v31 = vpack.i.b16 %v1206_v26, %v1205_v23  ;;  %v1006_v35 = vrot.slane %v999_v24, %v2981_v54  ;;  %v1212_v36 = vshrl.u32 %v1201_v27, 16 }
 0x2d7   : >> { %v1024_v33 = vcombine.low %v1015_v28, %v1023_v29  ;;  %2461 = vmatpush3.bf16.xpose.msra.mxu1 %v1388_v30  ;;  %v1210_v38 = vpack.i.b16 %v1201_v27, %v1176_v32  ;;  %v2364_v28 = vld [vmem:[%s3251_s9] ss:$0 sm:$0xff] }
 0x2d8   : >> { %v1434_v34 = vsel %vm1383_vm3, %v1207_v31, 0  ;;  %2472 = vmatprep.subr.bf16.mxu1 %v2722_v21  ;;  %v1036_v42 = vshrl.u32 %v1006_v35, 16  ;;  %v1213_v43 = vpack.i.b16 %v1212_v36, %v1211_v39  ;;  %v1007_v49 = vcombine.high %v1006_v35, %v2729_v0 }
 0x2d9   : >> { %2467 = vmatpush3.bf16.xpose.msra.mxu0 %v1434_v34  ;;  %v1031_v37 = vrot.slane %v1024_v33, %v2981_v54  ;;  %v1480_v44 = vsel %vm1383_vm3, %v1210_v38, 0  ;;  %v871_v30 = vadd.f32 %v2364_v28, %v870_v56 }
 0x2da   : >> { %2478 = vmatprep.subr.bf16.mxu0 %v2722_v21  ;;  %v1526_v47 = vsel %vm1383_vm3, %v1213_v43, 0  ;;  %v1042_v53 = vshrl.u32 %v1007_v49, 16 }
 0x2db   : >> { %v1037_v40 = vshrl.u32 %v1031_v37, 16  ;;  %v1035_v41 = vpack.i.b16 %v1031_v37, %v1006_v35  ;;  %v1032_v46 = vcombine.high %v1031_v37, %v2729_v0  ;;  %v1214_v31 = vpack.c.bf16 %v871_v30, %v871_v30 }
 0x2dd   : >> { %v1038_v45 = vpack.i.b16 %v1037_v40, %v1036_v42  ;;  %v1043_v51 = vshrl.u32 %v1032_v46, 16  ;;  %v1041_v52 = vpack.i.b16 %v1032_v46, %v1007_v49 }
 0x2de   : >> { %2463 = vmatmul.mubr.msk.bf16.vlgmr.msra.gmra.mrb[4].mxu1 %vm1383_vm3, %v1035_v41 }
 0x2df   : >> { %2473 = vmatpush3.bf16.xpose.msra.mxu1 %v1480_v44  ;;  %2474 = vmatprep.mubr.msk.bf16.mxu1 %vm2723_vm2, %v2722_v21  ;;  %v1044_v55 = vpack.i.b16 %v1043_v51, %v1042_v53 }
 0x2e0   : >> { %2469 = vmatmul.mubr.msk.bf16.vlgmr.msra.gmra.mrb[8].mxu0 %vm1383_vm3, %v1038_v45  ;;  %2484 = vmatprep.subr.bf16.mxu1 %v2722_v21 }
 0x2e1   : >> { %2479 = vmatpush3.bf16.xpose.msra.mxu0 %v1526_v47  ;;  %2480 = vmatprep.mubr.msk.bf16.mxu0 %vm2723_vm2, %v2722_v21 }
 0x2e2   : >> { %2490 = vmatprep.subr.bf16.mxu0 %v2722_v21 }
 0x2e6   : >> { %2475 = vmatmul.mubr.msk.bf16.vlgmr.msra.gmra.mrb[8].mxu1 %vm1383_vm3, %v1041_v52 }
 0x2e7   : >> { %2486 = vmatprep.mubr.msk.bf16.mxu1 %vm2723_vm2, %v2722_v21 }
 0x2e8   : >> { %2481 = vmatmul.mubr.msk.bf16.vlgmr.msra.gmra.mrb[12].mxu0 %vm1383_vm3, %v1044_v55 }
 0x2e9   : >> { %2492 = vmatprep.mubr.msk.bf16.mxu0 %vm2723_vm2, %v2722_v21 }
 0x3b1   : >> { %v1424_v62 = vpop.f32.mrb[4].mxu1 }
 0x3b2   : >> { %v1568_v63 = vmul.f32 0.35355338, %v1424_v62  ;;  %v2464_v1 = vpop.f32.mrb[5].mxu1 }
 0x3b3   : >> { %v1427_v2 = vpop.f32.mrb[6].mxu1  ;;  %v1470_v3 = vpop.f32.mrb[8].mxu0  ;;  %v1228_v1 = vrot.slane %v1214_v31, %v2977_v50 }
 0x3b4   : >> { %v1569_v5 = vmul.f32 0.35355338, %v1470_v3  ;;  %v2465_v6 = vpop.f32.mrb[7].mxu1  ;;  %v2470_v7 = vpop.f32.mrb[9].mxu0  ;;  %v1578_v8 = vadd.f32 %v1576_v61, %v1568_v63 }
 0x3b5   : >> { %v1473_v9 = vpop.f32.mrb[10].mxu0 }
 0x3b6   : >> { %v2471_v10 = vpop.f32.mrb[11].mxu0  ;;  %v1582_v11 = vsel %vm1383_vm3, %v1578_v8, -inf  ;;  %v1579_v12 = vadd.f32 %v1576_v61, %v1569_v5 }
 0x3b7   : >> { %1583 = vmax.xlane.f32.xlu0 %v1582_v11 }
 0x3b8   : >> { %v1585_v13 = vsel %vm1383_vm3, %v1579_v12, -inf }
 0x3b9   : >> { %v1516_v48 = vpop.f32.mrb[8].mxu1  ;;  %1586 = vmax.xlane.f32.xlu1 %v1585_v13 }
 0x3ba   : >> { %v1570_v14 = vmul.f32 0.35355338, %v1516_v48  ;;  %v2476_v15 = vpop.f32.mrb[9].mxu1 }
 0x3bb   : >> { %v1519_v16 = vpop.f32.mrb[10].mxu1  ;;  %v1562_v17 = vpop.f32.mrb[12].mxu0 }
 0x3bc   : >> { %v1571_v18 = vmul.f32 0.35355338, %v1562_v17  ;;  %v2477_v20 = vpop.f32.mrb[11].mxu1  ;;  %v2482_v22 = vpop.f32.mrb[13].mxu0  ;;  %v1580_v23 = vadd.f32 %v1576_v61, %v1570_v14 }
 0x3bd   : >> { %v1565_v24 = vpop.f32.mrb[14].mxu0 }
 0x3be   : >> { %v2483_v25 = vpop.f32.mrb[15].mxu0  ;;  %v1588_v26 = vsel %vm1383_vm3, %v1580_v23, -inf  ;;  %v1581_v27 = vadd.f32 %v1576_v61, %v1571_v18 }
 0x3bf   : >> { %1589 = vmax.xlane.f32.xlu0 %v1588_v26 }
 0x3c0   : >> { %v1591_v29 = vsel %vm1383_vm3, %v1581_v27, -inf }
 0x3c3   : >> { %1592 = vmax.xlane.f32.xlu0 %v1591_v29 }
 0x3ca   : >> { %1216 = vrot.lane.b32.xlu1 %v1214_v31, %s2725_s28 }
 0x444   : >> { %v1584_v32 = vpop.xlane.xlu0 %1583 }
 0x445   : >> { %v1594_v33 = vsub.f32 %v1578_v8, %v1584_v32 }
 0x446   : >> { %v1587_v34 = vpop.xlane.xlu1 %1586 }
 0x447   : >> { %v1598_v35 = vmul.f32 1.442695, %v1594_v33  ;;  %v1595_v36 = vsub.f32 %v1579_v12, %v1587_v34 }
 0x449   : >> { %2619 = vpow2.f32 %v1598_v35  ;;  %v1600_v37 = vmul.f32 1.442695, %v1595_v36 }
 0x44a   : >> { %v1217_v55 = vpop.permute.xlu1 %1216 }
 0x44b   : >> { %2621 = vpow2.f32 %v1600_v37  ;;  %v1262_v59 = vrot.slane %v1217_v55, %v2977_v50 }
 0x44c   : >> { %v1590_v42 = vpop.xlane.xlu0 %1589 }
 0x44d   : >> { %v1596_v44 = vsub.f32 %v1580_v23, %v1590_v42 }
 0x44f   : >> { %v1602_v46 = vmul.f32 1.442695, %v1596_v44 }
 0x450   : >> { %v1593_v43 = vpop.xlane.xlu0 %1592 }
 0x451   : >> { %v1597_v45 = vsub.f32 %v1581_v27, %v1593_v43  ;;  %2623 = vpow2.f32 %v1602_v46 }
 0x453   : >> { %v3052_v38 = vpop.eup %2619  ;;  %v1604_v47 = vmul.f32 1.442695, %v1597_v45 }
 0x454   : >> { %v1606_v39 = vsel %vm1383_vm3, %v3052_v38, 0.0 }
 0x455   : >> { %v3056_v40 = vpop.eup %2621  ;;  %1607 = vadd.xlane.f32.xlu1 %v1606_v39  ;;  %2625 = vpow2.f32 %v1604_v47 }
 0x456   : >> { %v1609_v41 = vsel %vm1383_vm3, %v3056_v40, 0.0 }
 0x457   : >> { %1610 = vadd.xlane.f32.xlu0 %v1609_v41 }
 0x45b   : >> { %v3062_v49 = vpop.eup %2623 }
 0x45c   : >> { %v1612_v52 = vsel %vm1383_vm3, %v3062_v49, 0.0 }
 0x45f   : >> { %v3064_v51 = vpop.eup %2625 }
 0x460   : >> { %v1615_v53 = vsel %vm1383_vm3, %v3064_v51, 0.0 }
 0x466   : >> { %1220 = vrot.lane.b32.xlu1 %v1214_v31, %s2724_s1 }
 0x46d   : >> { %1218 = vrot.lane.b32.xlu0 %v1214_v31, %s2726_s23  ;;  %s2259_s23 = scalar_lea.sflag (%p678_p11), [#allocation3], %s3296_s27 }
 0x48a   : >> { %1613 = vadd.xlane.f32.xlu1 %v1612_v52 }
 0x48c   : >> { %1616 = vadd.xlane.f32.xlu0 %v1615_v53 }
 0x4e2   : >> { %v1608_v56 = vpop.xlane.xlu1 %1607 }
 0x4e3   : >> { %2627 = vrcp.f32 %v1608_v56 }
 0x4e4   : >> { %v1611_v57 = vpop.xlane.xlu0 %1610 }
 0x4e5   : >> { %2629 = vrcp.f32 %v1611_v57 }
 0x4e6   : >> { %v1221_v58 = vpop.permute.xlu1 %1220 }
 0x4e7   : >> { %v1270_v60 = vrot.slane %v1221_v58, %v2977_v50 }
 0x4e8   : >> { %v1219_v61 = vpop.permute.xlu0 %1218 }
 0x4e9   : >> { %v1271_v62 = vcombine.low %v1262_v59, %v1270_v60  ;;  %v1272_v63 = vcombine.high %v1262_v59, %v1270_v60  ;;  %v1236_v2 = vrot.slane %v1219_v61, %v2977_v50 }
 0x4eb   : >> { %v1279_v3 = vrot.slane %v1271_v62, %v2981_v54  ;;  %v1286_v5 = vrot.slane %v1272_v63, %v2981_v54  ;;  %v1237_v6 = vcombine.low %v1228_v1, %v1236_v2  ;;  %v1238_v7 = vcombine.high %v1228_v1, %v1236_v2 }
 0x4ed   : >> { %v1287_v8 = vcombine.high %v1279_v3, %v2729_v0  ;;  %v1288_v9 = vcombine.high %v1286_v5, %v2729_v0  ;;  %v1245_v10 = vrot.slane %v1237_v6, %v2981_v54  ;;  %v1252_v11 = vrot.slane %v1238_v7, %v2981_v54  ;;  %v2628_v37 = vpop.eup %2627 }
 0x4ee   : >> { %v1294_v12 = vshrl.u32 %v1279_v3, 16  ;;  %v1310_v13 = vshrl.u32 %v1286_v5, 16  ;;  %v1622_v52 = vmul.f32 %v2628_v37, %v3052_v38 }
 0x4ef   : >> { %v1302_v48 = vshrl.u32 %v1287_v8, 16  ;;  %v1253_v14 = vcombine.high %v1245_v10, %v2729_v0  ;;  %v1254_v15 = vcombine.high %v1252_v11, %v2729_v0  ;;  %v1291_v16 = vpack.i.b16 %v1279_v3, %v1245_v10  ;;  %v2630_v43 = vpop.eup %2629 }
 0x4f0   : >> { %v1318_v17 = vshrl.u32 %v1288_v9, 16  ;;  %v1293_v18 = vshrl.u32 %v1245_v10, 16  ;;  %v1307_v20 = vpack.i.b16 %v1286_v5, %v1252_v11  ;;  %v1309_v22 = vshrl.u32 %v1252_v11, 16 }
 0x4f1   : >> { %v1299_v23 = vpack.i.b16 %v1287_v8, %v1253_v14  ;;  %v1301_v24 = vshrl.u32 %v1253_v14, 16  ;;  %v1315_v25 = vpack.i.b16 %v1288_v9, %v1254_v15  ;;  %v1317_v26 = vshrl.u32 %v1254_v15, 16 }
 0x4f2   : >> { %v1295_v27 = vpack.i.b16 %v1294_v12, %v1293_v18  ;;  %v1311_v28 = vpack.i.b16 %v1310_v13, %v1309_v22  ;;  %v1321_v29 = vcombine.low %v1291_v16, %v1307_v20  ;;  %v1623_v58 = vmul.f32 %v2630_v43, %v3056_v40 }
 0x4f3   : >> { %v1303_v30 = vpack.i.b16 %v1302_v48, %v1301_v24  ;;  %v1319_v31 = vpack.i.b16 %v1318_v17, %v1317_v26  ;;  %v1329_v32 = vcombine.low %v1299_v23, %v1315_v25  ;;  %v1626_v2 = vpack.c.bf16 %v1622_v52, %v1622_v52 }
 0x4f4   : >> { %v1346_v33 = vcombine.low %v1295_v27, %v1311_v28  ;;  %v1328_v34 = vrot.slane %v1321_v29, %v2977_v50  ;;  %v1627_v3 = vpack.c.bf16 %v1623_v58, %v1623_v58 }
 0x4f5   : >> { %v1354_v35 = vcombine.low %v1303_v30, %v1319_v31  ;;  %v1336_v36 = vrot.slane %v1329_v32, %v2977_v50 }
 0x4f6   : >> { %v1353_v41 = vrot.slane %v1346_v33, %v2977_v50 }
 0x4f7   : >> { %v1337_v39 = vcombine.low %v1328_v34, %v1336_v36  ;;  %v1361_v42 = vrot.slane %v1354_v35, %v2977_v50 }
 0x4f9   : >> { %v1344_v44 = vrot.slane %v1337_v39, %v2981_v54  ;;  %v1362_v45 = vcombine.low %v1353_v41, %v1361_v42  ;;  %v2611_v42 = vld [vmem:[%s3252_s10] sm:$0xff]  }
 0x4fb   : >> { %v1369_v46 = vrot.slane %v1362_v45, %v2981_v54  ;;  %v1345_v47 = vcombine.high %v1344_v44, %v2729_v0  ;;  %v1374_v55 = vshrl.u32 %v1344_v44, 16 }
 0x4fd   : >> { %v1373_v53 = vpack.i.b16 %v1369_v46, %v1344_v44  ;;  %v1375_v56 = vshrl.u32 %v1369_v46, 16  ;;  %v1370_v57 = vcombine.high %v1369_v46, %v2729_v0  ;;  %v1380_v59 = vshrl.u32 %v1345_v47, 16 }
 0x4ff   : >> { %v1635_v60 = vsel %vm1633_vm4, %v1373_v53, 0  ;;  %v1376_v61 = vpack.i.b16 %v1375_v56, %v1374_v55  ;;  %v1379_v62 = vpack.i.b16 %v1370_v57, %v1345_v47  ;;  %v1381_v63 = vshrl.u32 %v1370_v57, 16 }
 0x500   : >> { %2485 = vmatpush3.bf16.msra.mxu1 %v1635_v60  ;;  %v2612_v60 = vld [vmem:[%s3252_s10 + $0x8] sm:$0xff]  }
 0x501   : >> { %v1681_v1 = vsel %vm1633_vm4, %v1376_v61, 0  ;;  %2496 = vmatprep.subr.bf16.mxu1 %v2722_v21  ;;  %v1382_v38 = vpack.i.b16 %v1381_v63, %v1380_v59  ;;  %v1727_v0 = vsel %vm1633_vm4, %v1379_v62, 0 }
 0x502   : >> { %2491 = vmatpush3.bf16.msra.mxu0 %v1681_v1 }
 0x503   : >> { %2487 = vmatmul.mubr.msk.bf16.vlgmr.msra.gmra.mrb[12].mxu1 %vm1383_vm3, %v1626_v2  ;;  %2502 = vmatprep.subr.bf16.mxu0 %v2722_v21  ;;  %v1773_v40 = vsel %vm1633_vm4, %v1382_v38, 0 }
 0x504   : >> { %2497 = vmatpush3.bf16.msra.mxu1 %v1727_v0  ;;  %2498 = vmatprep.mubr.msk.bf16.mxu1 %vm2723_vm2, %v2722_v21 }
 0x505   : >> { %2493 = vmatmul.mubr.msk.bf16.vlgmr.msra.gmra.mrb[16].mxu0 %vm1383_vm3, %v1627_v3  ;;  %2508 = vmatprep.subr.bf16.mxu1 %v2722_v21 }
 0x506   : >> { %2503 = vmatpush3.bf16.msra.mxu0 %v1773_v40  ;;  %2504 = vmatprep.mubr.msk.bf16.mxu0 %vm2723_vm2, %v2722_v21 }
 0x507   : >> { %2516 = vmatprep.subr.bf16.mxu0 %v2722_v21 }
 0x517   : >> { %v1614_v5 = vpop.xlane.xlu1 %1613 }
 0x518   : >> { %2631 = vrcp.f32 %v1614_v5 }
 0x519   : >> { %v1617_v6 = vpop.xlane.xlu0 %1616 }
 0x51a   : >> { %2633 = vrcp.f32 %v1617_v6 }
 0x522   : >> { %v2632_v7 = vpop.eup %2631 }
 0x523   : >> { %v1624_v8 = vmul.f32 %v2632_v7, %v3062_v49 }
 0x524   : >> { %v2634_v9 = vpop.eup %2633 }
 0x525   : >> { %v1625_v10 = vmul.f32 %v2634_v9, %v3064_v51  ;;  %v1628_v11 = vpack.c.bf16 %v1624_v8, %v1624_v8 }
 0x527   : >> { %2499 = vmatmul.mubr.msk.bf16.vlgmr.msra.gmra.mrb[16].mxu1 %vm1383_vm3, %v1628_v11  ;;  %v1629_v12 = vpack.c.bf16 %v1625_v10, %v1625_v10 }
 0x528   : >> { %2512 = vmatprep.mubr.msk.bf16.mxu1 %vm2723_vm2, %v2722_v21  ;;  %2509 = vmatpush3.bf16.msra.mxu1 %v2611_v42  ;;  %v2384_v42 = vld [vmem:[%s3257_s15] ss:$0 sm:$0xff] }
 0x529   : >> { %2505 = vmatmul.mubr.msk.bf16.vlgmr.msra.gmra.mrb[20].mxu0 %vm1383_vm3, %v1629_v12  ;;  %2510 = vmatprep.subr.bf16.mxu1 %v2722_v21 }
 0x52a   : >> { %2520 = vmatprep.mubr.msk.bf16.mxu0 %vm2723_vm2, %v2722_v21 }
 0x52c   : >> { %2511 = vmatpush3.bf16.msra.mxu1 %v2612_v60 }
 0x52d   : >> { %2524 = vmatprep.subr.bf16.mxu1 %v2722_v21 }
 0x5d6   : >> { %v1671_v13 = vpop.f32.mrb[12].mxu1 }
 0x5d7   : >> { %v2488_v48 = vpop.f32.mrb[13].mxu1 }
 0x5d8   : >> { %v1674_v14 = vpop.f32.mrb[14].mxu1  ;;  %v1717_v15 = vpop.f32.mrb[16].mxu0 }
 0x5d9   : >> { %v2489_v49 = vpop.f32.mrb[15].mxu1  ;;  %v2494_v16 = vpop.f32.mrb[17].mxu0 }
 0x5da   : >> { %v1720_v17 = vpop.f32.mrb[18].mxu0 }
 0x5db   : >> { %v2495_v51 = vpop.f32.mrb[19].mxu0 }
 0x5fa   : >> { %v1763_v18 = vpop.f32.mrb[16].mxu1 }
 0x5fb   : >> { %v1815_v20 = vcombine.low %v1671_v13, %v1763_v18  ;;  %v1816_v22 = vcombine.high %v1671_v13, %v1763_v18  ;;  %v2500_v23 = vpop.f32.mrb[17].mxu1  ;;  %v2378_v13 = vld [vmem:[%s3253_s11] ss:$0 sm:$0xff] }
 0x5fc   : >> { %v1766_v24 = vpop.f32.mrb[18].mxu1  ;;  %v1809_v25 = vpop.f32.mrb[20].mxu0 }
 0x5fd   : >> { %v1831_v26 = vcombine.low %v1717_v15, %v1809_v25  ;;  %v1832_v27 = vcombine.high %v1717_v15, %v1809_v25  ;;  %v2501_v28 = vpop.f32.mrb[19].mxu1  ;;  %v2506_v29 = vpop.f32.mrb[21].mxu0  ;;  %v1823_v31 = vrot.slane %v1815_v20, %v2977_v50  ;;  %v1830_v32 = vrot.slane %v1816_v22, %v2977_v50  ;;  %v2613_v25 = vld [vmem:[%s3256_s14] sm:$0xff]  }
 0x5fe   : >> { %v1812_v30 = vpop.f32.mrb[22].mxu0  ;;  %2517 = vmatpush3.bf16.msra.mxu0 %v2613_v25 }
 0x5ff   : >> { %v1839_v33 = vrot.slane %v1831_v26, %v2977_v50  ;;  %v1846_v34 = vrot.slane %v1832_v27, %v2977_v50  ;;  %v2507_v35 = vpop.f32.mrb[23].mxu0  ;;  %v2614_v26 = vld [vmem:[%s3256_s14 + $0x8] sm:$0xff]   ;;  %2518 = vmatprep.subr.bf16.mxu0 %v2722_v21  ;;  %v2382_v30 = vld [vmem:[%s3254_s12] ss:$0 sm:$0xff] }
 0x601   : >> { %v1847_v36 = vcombine.low %v1823_v31, %v1839_v33  ;;  %v1848_v37 = vcombine.high %v1823_v31, %v1839_v33  ;;  %v1863_v39 = vcombine.low %v1830_v32, %v1846_v34  ;;  %v1864_v41 = vcombine.high %v1830_v32, %v1846_v34  ;;  %v2383_v32 = vld [vmem:[%s3255_s13] ss:$0 sm:$0xff] }
 0x602   : >> { %2519 = vmatpush3.bf16.msra.mxu0 %v2614_v26 }
 0x603   : >> { %v1855_v43 = vrot.slane %v1847_v36, %v2981_v54  ;;  %v1862_v44 = vrot.slane %v1848_v37, %v2981_v54  ;;  %v1871_v45 = vrot.slane %v1863_v39, %v2981_v54  ;;  %v1878_v46 = vrot.slane %v1864_v41, %v2981_v54  ;;  %v2615_v36 = vld [vmem:[%s3258_s16] sm:$0xff]   ;;  %v2616_v37 = vld [vmem:[%s3258_s16 + $0x8] sm:$0xff]   ;;  %v2617_v39 = vld [vmem:[%s3258_s16 + $0x10] sm:$0xff]  }
 0x604   : >> { %v2618_v41 = vld [vmem:[%s3258_s16 + $0x18] sm:$0xff]  }
 0x605   : >> { %v1883_v47 = vcombine.low %v1855_v43, %v1862_v44  ;;  %v2376_v52 = vcombine.high %v1855_v43, %v1862_v44  ;;  %v1899_v53 = vcombine.low %v1871_v45, %v1878_v46  ;;  %v2377_v55 = vcombine.high %v1871_v45, %v1878_v46 }
 0x607   : >> { %v1890_v56 = vrot.slane %v1883_v47, %v2977_v50  ;;  %v1898_v57 = vrot.slane %v2376_v52, %v2977_v50  ;;  %v1906_v58 = vrot.slane %v1899_v53, %v2977_v50  ;;  %v1914_v59 = vrot.slane %v2377_v55, %v2977_v50 }
 0x609   : >> { %v1916_v61 = vcombine.high %v1890_v56, %v1898_v57  ;;  %v1932_v62 = vcombine.high %v1906_v58, %v1914_v59  ;;  %v1915_v63 = vcombine.low %v1890_v56, %v1898_v57  ;;  %v1931_v1 = vcombine.low %v1906_v58, %v1914_v59 }
 0x60b   : >> { %v1930_v2 = vrot.slane %v1916_v61, %v2981_v54  ;;  %v1946_v38 = vrot.slane %v1932_v62, %v2981_v54  ;;  %v1923_v0 = vrot.slane %v1915_v63, %v2981_v54  ;;  %v1939_v3 = vrot.slane %v1931_v1, %v2981_v54  ;;  %v2388_v62 = vld [vmem:[%s3259_s17] ss:$0 sm:$0xff] }
 0x60d   : >> { %v1949_v50 = vcombine.low %v1930_v2, %v1946_v38  ;;  %v1948_v40 = vcombine.high %v1923_v0, %v1939_v3  ;;  %v1950_v5 = vcombine.high %v1930_v2, %v1946_v38  ;;  %v1947_v6 = vcombine.low %v1923_v0, %v1939_v3 }
 0x60f   : >> { %1956 = vrot.lane.b32.xlu1 %v1949_v50, %s2730_s25  ;;  %1952 = vrot.lane.b32.xlu0 %v1948_v40, %s2731_s26  ;;  %s3200_s26 = scalar_lea.hbm (%p678_p11), %s3262_s20, %s2397_s0 }
 0x613   : >> { %1960 = vrot.lane.b32.xlu1 %v1950_v5, %s2732_s30  ;;  %s3294_s30 = scalar_lea.vmem (%p678_p11), [#allocation2], %s2902_s3 }
 0x614   : > { %s2272_s1 = sshll.u32 (%p678_p11), %s3294_s30, 4  ;;  %s3295_s28 = smov (%p678_p11), %s3294_s30  ;;  %s2273_s1 = int_to_ptr.vmem [resolvable:$true] %s2272_s1 }
 0x615   : > { %s2641_s6 = scalar_lea.vmem (%p678_p11), %s2273_s1, 64  ;;  %p2648_p1 = scmp.lt.s32.totalorder (%p678_p11), %s2273_s1, %s2646_s8 }
 0x616   : > { %p2642_p12 = scmp.ne.s32.totalorder (%p678_p11), %s2273_s1, %s2641_s6  ;;  %p2649_p2 = scmp.lt.s32.totalorder (%p678_p11), %s2647_s2, %s2641_s6 }
 0x618   : > { %p2643_p13 = pnand (%p678_p11), %p2642_p12, %p2877_p5  ;;  %p2650_p3 = por (%p678_p11), %p2649_p2, %p2648_p1 }
 0x61a   : > { %p2644_p0 = pneg (%p678_p11), %p2643_p13 }
 0x61c   : > { %p2651_p4 = pnand (%p678_p11), %p2650_p3, %p2644_p0 }
 0x681   : >> { %v1957_v7 = vpop.permute.xlu1 %1956  ;;  %v1953_v8 = vpop.permute.xlu0 %1952 }
 0x682   : >> { %v1963_v9 = vsel %vm1383_vm3, %v1947_v6, %v1953_v8 }
 0x683   : >> { %v1965_v11 = vsel %vm1964_vm5, %v1963_v9, %v1957_v7 }
 0x685   : >> { %v1961_v10 = vpop.permute.xlu1 %1960 }
 0x686   : >> { %v1967_v12 = vsel %vm1966_vm6, %v1965_v11, %v1961_v10 }
 0x687   : >> { %v1968_v54 = vpack.c.bf16 %v1967_v12, %v1967_v12 }
 0x689   : >> { %2513 = vmatmul.mubr.msk.bf16.vlgmr.msra.gmra.mrb[20].mxu1 %vm647_vm0, %v1968_v54  ;;  %v2394_v54 = vld [vmem:[%s3260_s18] ss:$0 sm:$0xff] }
 0x68a   : >> { %2532 = vmatprep.mubr.msk.bf16.mxu1 %vm2723_vm2, %v2722_v21  ;;  %2525 = vmatpush3.bf16.msra.mxu1 %v2615_v36 }
 0x68b   : >> { %2526 = vmatprep.subr.bf16.mxu1 %v2722_v21 }
 0x68e   : >> { %2527 = vmatpush3.bf16.msra.mxu1 %v2616_v37 }
 0x68f   : >> { %2528 = vmatprep.subr.bf16.mxu1 %v2722_v21 }
 0x692   : >> { %2529 = vmatpush3.bf16.msra.mxu1 %v2617_v39 }
 0x693   : >> { %2530 = vmatprep.subr.bf16.mxu1 %v2722_v21 }
 0x696   : >> { %2531 = vmatpush3.bf16.msra.mxu1 %v2618_v41 }
 0x75c   : >> { %v2029_v48 = vpop.f32.mrb[20].mxu1 }
 0x75d   : >> { %v2030_v14 = vadd.f32 %v2378_v13, %v2029_v48  ;;  %v2514_v15 = vpop.f32.mrb[21].mxu1  ;;  %v2395_v48 = vld [vmem:[%s3261_s19] ss:$0 sm:$0xff] }
 0x75e   : >> { %v2032_v49 = vpop.f32.mrb[22].mxu1 }
 0x75f   : >> { %v2515_v16 = vpop.f32.mrb[23].mxu1  ;;  %v2035_v17 = vadd.f32 %v2715_v19, %v2030_v14 }
 0x761   : >> { %v2038_v51 = vsel %vm647_vm0, %v2035_v17, 0.0 }
 0x762   : >> { %2039 = vadd.xlane.f32.xlu0 %v2038_v51 }
 0x7ef   : >> { %v2040_v18 = vpop.xlane.xlu0 %2039 }
 0x7f0   : >> { %v2041_v20 = vmul.f32 0.03125, %v2040_v18 }
 0x7f2   : >> { %v2042_v22 = vsub.f32 %v2035_v17, %v2041_v20 }
 0x7f4   : >> { %v2043_v23 = vmul.f32 %v2042_v22, %v2042_v22 }
 0x7f6   : >> { %v2044_v24 = vsel %vm647_vm0, %v2043_v23, 0.0 }
 0x7f7   : >> { %2045 = vadd.xlane.f32.xlu1 %v2044_v24 }
 0x884   : >> { %v2046_v19 = vpop.xlane.xlu1 %2045 }
 0x885   : >> { %v2047_v27 = vmul.f32 0.03125, %v2046_v19 }
 0x887   : >> { %v2048_v28 = vadd.f32 1e-12, %v2047_v27 }
 0x889   : >> { %2635 = vrsqrt.f32 %v2048_v28 }
 0x893   : >> { %v2636_v29 = vpop.eup %2635 }
 0x894   : >> { %v2050_v31 = vmul.f32 %v2636_v29, %v2042_v22 }
 0x896   : >> { %v2057_v33 = vmul.f32 %v2382_v30, %v2050_v31 }
 0x898   : >> { %v2064_v34 = vadd.f32 %v2383_v32, %v2057_v33 }
 0x89a   : >> { %v2065_v35 = vpack.c.bf16 %v2064_v34, %v2064_v34 }
 0x89c   : >> { %2521 = vmatmul.mubr.msk.bf16.vlgmr.msra.gmra.mrb[24].mxu0 %vm647_vm0, %v2065_v35 }
 0x96f   : >> { %v2126_v43 = vpop.f32.mrb[24].mxu0 }
 0x970   : >> { %v2127_v44 = vadd.f32 %v2384_v42, %v2126_v43  ;;  %v2522_v45 = vpop.f32.mrb[25].mxu0 }
 0x971   : >> { %v2129_v46 = vpop.f32.mrb[26].mxu0 }
 0x972   : >> { %v2132_v47 = vmul.f32 %v2127_v44, %v2127_v44  ;;  %v2523_v52 = vpop.f32.mrb[27].mxu0 }
 0x974   : >> { %v2133_v53 = vmul.f32 %v2132_v47, %v2127_v44 }
 0x976   : >> { %v2134_v55 = vmul.f32 0.044715, %v2133_v53 }
 0x978   : >> { %v2135_v56 = vadd.f32 %v2134_v55, %v2127_v44 }
 0x97a   : >> { %v2136_v57 = vmul.f32 0.7978846, %v2135_v56 }
 0x97c   : >> { %2637 = vtanh.f32 %v2136_v57 }
 0x986   : >> { %v2638_v21 = vpop.eup %2637 }
 0x987   : >> { %v2138_v58 = vadd.f32 1.0, %v2638_v21 }
 0x989   : >> { %v2139_v59 = vmul.f32 0.5, %v2138_v58 }
 0x98b   : >> { %v2140_v60 = vmul.f32 %v2139_v59, %v2127_v44 }
 0x98d   : >> { %v2141_v61 = vpack.c.bf16 %v2140_v60, %v2140_v60 }
 0x98f   : >> { %2533 = vmatmul.mubr.msk.bf16.vlgmr.msra.gmra.mrb[24].mxu1 %vm2181_vm7, %v2141_v61 }
 0xa62   : >> { %v2219_v63 = vpop.f32.mrb[24].mxu1 }
 0xa63   : >> { %v2220_v1 = vadd.f32 %v2388_v62, %v2219_v63  ;;  %v2534_v2 = vpop.f32.mrb[25].mxu1 }
 0xa64   : >> { %v2222_v38 = vpop.f32.mrb[26].mxu1 }
 0xa65   : >> { %v2535_v0 = vpop.f32.mrb[27].mxu1  ;;  %v2225_v3 = vadd.f32 %v2220_v1, %v2064_v34 }
 0xa67   : >> { %v2228_v50 = vsel %vm647_vm0, %v2225_v3, 0.0 }
 0xa68   : >> { %2229 = vadd.xlane.f32.xlu0 %v2228_v50 }
 0xaf5   : >> { %v2230_v40 = vpop.xlane.xlu0 %2229 }
 0xaf6   : >> { %v2231_v5 = vmul.f32 0.03125, %v2230_v40 }
 0xaf8   : >> { %v2232_v6 = vsub.f32 %v2225_v3, %v2231_v5 }
 0xafa   : >> { %v2233_v7 = vmul.f32 %v2232_v6, %v2232_v6 }
 0xafc   : >> { %v2234_v8 = vsel %vm647_vm0, %v2233_v7, 0.0 }
 0xafd   : >> { %2235 = vadd.xlane.f32.xlu0 %v2234_v8 }
 0xb8a   : >> { %v2236_v9 = vpop.xlane.xlu0 %2235 }
 0xb8b   : >> { %v2237_v10 = vmul.f32 0.03125, %v2236_v9 }
 0xb8d   : >> { %v2238_v11 = vadd.f32 1e-12, %v2237_v10 }
 0xb8f   : >> { %2639 = vrsqrt.f32 %v2238_v11 }
 0xb99   : >> { %v2640_v12 = vpop.eup %2639 }
 0xb9a   : >> { %v2240_v13 = vmul.f32 %v2640_v12, %v2232_v6  ;;  %680 = sbr.rel (!%p678_p11) target bundleno = 352 (0x160), region = 145 }
 0xb9c   : >> { %v2247_v14 = vmul.f32 %v2394_v54, %v2240_v13 }
 0xb9e   : >> { %v2254_v15 = vadd.f32 %v2395_v48, %v2247_v14  }
 0xba0   : >> { %v3293_v19 = vmov %v2254_v15  ;;  %v2255_v49 = vpack.c.bf16 (%p678_p11), %v2254_v15, %v2254_v15 }
 0xba2   : > { %2257 = vst.msk [vmem:[%s3295_s28] sm:$0xf] %vm2256_vm8, %v2255_v49 }
 0xba3   : > { %2654 = shalt.err (!%p2651_p4)
}
 0xba4   : > { %s2655_s3 = scalar_lea.hbm %s3200_s26, 64  ;;  %s2659_s7 = scalar_lea.hbm %s3262_s20, 128 }
 0xba5   : > { %p2656_p7 = scmp.ne.s32.totalorder %s3200_s26, %s2655_s3  ;;  %p2660_p10 = scmp.lt.u32.totalorder %s3200_s26, %s3262_s20 }
 0xba6   : > { %p2661_p11 = scmp.lt.u32.totalorder %s2659_s7, %s2655_s3  ;;  %p2663_p13 = scmp.lt.u32.totalorder %s2655_s3, %s3200_s26 }
 0xba7   : > { %p2657_p8 = pnand %p2656_p7, %p2877_p5 }
 0xba8   : > { %p2662_p12 = por %p2661_p11, %p2660_p10 }
 0xba9   : > { %p2658_p9 = pneg %p2657_p8 }
 0xbaa   : > { %p2664_p0 = por %p2663_p13, %p2662_p12 }
 0xbac   : > { %p2665_p1 = pnand %p2664_p0, %p2658_p9 }
 0xbae   : > { %2668 = shalt.err (!%p2665_p1)
}
 0xbaf   : > { %2536 = dma.vmem_to_hbm [thread:$0]  (%p2877_p5), %s2273_s1, 64, %s3200_s26, %s2259_s23  }
 0xbb0 PF: > { %s3297_s6 = sld [smem:[#allocation5_spill]]  ;;  %p2542_p2 = scmp.ge.s32.totalorder %s2711_s24, 2 }
 0xbb2   : > { %p2539_p3 = pnand %p2542_p2, %p2881_p6 }
 0xbb6   : > { %s2284_s30 = sand.u32 1, %s3297_s6  }
 0xbb7   : > { %s2285_s28 = scalar_lea.sflag [#allocation3], %s2284_s30 }
 0xbb8   : > { %2694 = dma.done.wait (!%p2539_p3), %s2285_s28, 64  }
 0xbb9   : > { %2696 = vsyncadd (!%p2539_p3), %s2285_s28, 4294967232  ;;  %s3298_s24 = sld [smem:[#allocation7_spill]]  ;;  %s3299_s27 = sld [smem:[#allocation6_spill]] }
 0xbba   : > { %s3300_s23 = sld [smem:[#allocation8_spill]]  ;;  %s3301_s1 = smov %s2703_s22 }
 0xbbf   : > { %p30_p4 = scmp.ge.s32.totalorder %s3298_s24, 4   ;;  %s3302_s22 = smov %s3299_s27 }
 0xbc1   :  { %32 = sbr.rel (!%p30_p4) target bundleno = 13 (0xd), region = 156 }
 0xbc8   :  { %2290 = vsyncpa [#allocation3], 1 }
 0xbc9   :  { %2292 = vsyncpa [#allocation3 + $0x1], 1 }

</bundles_post_ra>
